<compile_context>
chip_gen: v6e
topology: v6e:2x2x1
jax: 0.10.0
libtpu: 0.0.40
codegen_flags: <defaults>
</compile_context>

<pallas_src>
import numpy as np
import jax
import jax.numpy as jnp
from jax import lax
from jax.experimental import pallas as pl
from jax.experimental.pallas import tpu as pltpu


def _round_up(x, m):
    return ((x + m - 1) // m) * m


def _compute_vmem_limit():
    # ~96 MiB on v5e/v6e (128 MiB physical), ~48 MiB on v7x (64 MiB physical).
    cap = 64 * 1024 * 1024
    try:
        info = pltpu.get_tpu_info()
        cap = int(getattr(info, "vmem_capacity_bytes", cap))
    except Exception:
        pass
    return int(min(cap * 3 // 4, 100 * 1024 * 1024))


_VMEM_LIMIT = _compute_vmem_limit()


def _tile_rows(rows):
    """Pick a row tile and padded row count (never a silent full-extent block)."""
    if rows >= 512:
        rt = 512
    elif rows >= 256:
        rt = 256
    else:
        rt = _round_up(rows, 8)
    return rt, _round_up(rows, rt)


def _tile_cols(cols):
    """Lane-dense column tile (128/256 multiple) when the dim allows it."""
    if cols % 256 == 0:
        return 256
    if cols % 128 == 0:
        return 128
    return cols  # full extent (small dims)


# ----------------------------------------------------------------------------
# Kernels 1 & 4: tiled linear  O = X @ W + b   (rows x cols grid, "parallel")
# ----------------------------------------------------------------------------
def linear_kernel(x_ref, w_ref, b_ref, o_ref):
    o_ref[...] = (jnp.dot(x_ref[...], w_ref[...],
                          preferred_element_type=jnp.float32) + b_ref[...])


def run_tiled_linear(x2d, w, b):
    rows, kdim = x2d.shape
    ncols = w.shape[1]
    rt, rows_p = _tile_rows(rows)
    if rows_p != rows:
        x2d = jnp.pad(x2d, ((0, rows_p - rows), (0, 0)))
    tn = _tile_cols(ncols)
    # TODO(synk): for very large kdim on v7x, add a K grid axis with a VMEM
    # accumulator (pl.when init / final store) and bf16 MXU operands.
    out = pl.pallas_call(
        linear_kernel,
        out_shape=jax.ShapeDtypeStruct((rows_p, ncols), jnp.float32),
        grid=(rows_p // rt, ncols // tn),
        in_specs=[pl.BlockSpec((rt, kdim), lambda i, j: (i, 0)),
                  pl.BlockSpec((kdim, tn), lambda i, j: (0, j)),
                  pl.BlockSpec((1, tn), lambda i, j: (0, j))],
        out_specs=pl.BlockSpec((rt, tn), lambda i, j: (i, j)),
        compiler_params=pltpu.CompilerParams(
            dimension_semantics=("parallel", "parallel"),
            vmem_limit_bytes=_VMEM_LIMIT),
    )(x2d, w, b)
    return out[:rows] if rows_p != rows else out


# ----------------------------------------------------------------------------
# Kernel 2: the serial recurrence, gridded over T with a VMEM carry.
# ----------------------------------------------------------------------------
def rnn_recurrence_kernel(u_ref, wh_ref, hid_ref, h_scr):
    @pl.when(pl.program_id(0) == 0)
    def _():
        h_scr[...] = jnp.zeros_like(h_scr)

    h = jnp.maximum(
        u_ref[0] + jnp.dot(h_scr[...], wh_ref[...],
                           preferred_element_type=jnp.float32), 0.0)
    h_scr[...] = h
    hid_ref[0] = h


def run_recurrence(u, wh):
    T, Bp, H = u.shape
    return pl.pallas_call(
        rnn_recurrence_kernel,
        out_shape=jax.ShapeDtypeStruct((T, Bp, H), jnp.float32),
        grid=(T,),
        in_specs=[pl.BlockSpec((1, Bp, H), lambda t: (t, 0, 0)),
                  pl.BlockSpec((H, H), lambda t: (0, 0))],
        out_specs=pl.BlockSpec((1, Bp, H), lambda t: (t, 0, 0)),
        scratch_shapes=[pltpu.VMEM((Bp, H), jnp.float32)],
        compiler_params=pltpu.CompilerParams(
            dimension_semantics=("arbitrary",),
            vmem_limit_bytes=_VMEM_LIMIT),
    )(u, wh)


# ----------------------------------------------------------------------------
# Kernel 3: RNN output projection + causal self-attention.
# Reads hid time-major (no XLA transpose), grid over batch tiles of 8.
# ----------------------------------------------------------------------------
def attn_kernel(hid_ref, wo_ref, bo_ref, wq_ref, bq_ref, wk_ref, bk_ref,
                wv_ref, bv_ref, wao_ref, bao_ref,
                hidden_ref, rnn_out_ref, attn_out_ref):
    T, BB, H = hid_ref.shape

    # In-VMEM transpose to batch-major; written straight out as `hidden`.
    h_bt = jnp.transpose(hid_ref[...], (1, 0, 2))          # (BB, T, H)
    hidden_ref[...] = h_bt
    h2d = h_bt.reshape(BB * T, H)

    # RNN output projection (pulled out of the recurrence).
    y2d = jnp.dot(h2d, wo_ref[...],
                  preferred_element_type=jnp.float32) + bo_ref[...]
    rnn_out_ref[...] = y2d.reshape(BB, T, H)

    # Q/K/V projections (1/sqrt(key_dim) pre-folded into Wq/bq).
    q2d = jnp.dot(y2d, wq_ref[...],
                  preferred_element_type=jnp.float32) + bq_ref[...]
    k2d = jnp.dot(y2d, wk_ref[...],
                  preferred_element_type=jnp.float32) + bk_ref[...]
    v2d = jnp.dot(y2d, wv_ref[...],
                  preferred_element_type=jnp.float32) + bv_ref[...]
    Kd = q2d.shape[1]
    Vd = v2d.shape[1]
    q = q2d.reshape(BB, T, Kd)
    k = k2d.reshape(BB, T, Kd)
    v = v2d.reshape(BB, T, Vd)

    s = jnp.einsum('btk,bsk->bts', q, k, preferred_element_type=jnp.float32)
    row = lax.broadcasted_iota(jnp.int32, (BB, T, T), 1)    # query index
    col = lax.broadcasted_iota(jnp.int32, (BB, T, T), 2)    # key index
    s = jnp.where(col <= row, s, -1e30)                     # causal mask
    s = s - jnp.max(s, axis=-1, keepdims=True)
    e = jnp.exp(s)
    # Exact reciprocal (EUP) for numerically-faithful softmax normalization.
    w = e * pl.reciprocal(jnp.sum(e, axis=-1, keepdims=True), approx=False)

    attn = jnp.einsum('bts,bsd->btd', w, v, preferred_element_type=jnp.float32)
    ao2d = jnp.dot(attn.reshape(BB * T, Vd), wao_ref[...],
                   preferred_element_type=jnp.float32) + bao_ref[...]
    attn_out_ref[...] = ao2d.reshape(BB, T, H)
    # TODO(synk): for large T, switch to a flash-style online softmax over key
    # tiles (running m/l/acc in VMEM scratch) instead of materializing (T,T).


def run_attention(hid_tbh, p):
    T, Bp, H = hid_tbh.shape
    Kd = p['wq_s'].shape[1]
    Vd = p['wv'].shape[1]
    BB = 8 if Bp % 8 == 0 else Bp      # Bp is always a multiple of 8 here

    def full(shape):
        return pl.BlockSpec(shape, lambda b: (0, 0))

    out_spec = pl.BlockSpec((BB, T, H), lambda b: (b, 0, 0))
    fn = pl.pallas_call(
        attn_kernel,
        out_shape=(jax.ShapeDtypeStruct((Bp, T, H), jnp.float32),
                   jax.ShapeDtypeStruct((Bp, T, H), jnp.float32),
                   jax.ShapeDtypeStruct((Bp, T, H), jnp.float32)),
        grid=(Bp // BB,),
        in_specs=[pl.BlockSpec((T, BB, H), lambda b: (0, b, 0)),  # time-major in
                  full((H, H)), full((1, H)),        # wo, bo
                  full((H, Kd)), full((1, Kd)),      # wq_s, bq_s
                  full((H, Kd)), full((1, Kd)),      # wk, bk
                  full((H, Vd)), full((1, Vd)),      # wv, bv
                  full((Vd, H)), full((1, H))],      # wao, bao
        out_specs=(out_spec, out_spec, out_spec),
        compiler_params=pltpu.CompilerParams(
            dimension_semantics=("parallel",),
            vmem_limit_bytes=_VMEM_LIMIT),
    )
    return fn(hid_tbh, p['wo'], p['bo'], p['wq_s'], p['bq_s'], p['wk'],
              p['bk'], p['wv'], p['bv'], p['wao'], p['bao'])


# ----------------------------------------------------------------------------
# Wrapper
# ----------------------------------------------------------------------------
def prepare_params(p):
    """One-time folding: bi+bh -> single bias, 1/sqrt(K) -> Wq/bq."""
    K = p['wq'].shape[1]
    inv = np.float32(1.0 / np.sqrt(K))
    q = dict(p)
    q['bih'] = p['bi'] + p['bh']
    q['wq_s'] = p['wq'] * inv
    q['bq_s'] = p['bq'] * inv
    # TODO(synk): for production dims, also zero-pad H/K/V/vocab to multiples
    # of 128 here (and slice outputs in the wrapper) for lane-dense stores,
    # and cast the big-GEMM weights to bf16 on v6e/v7x.
    return q


def rnn_language_model_forward(tokens, p):
    """tokens: (B, T) int32 -> (logits (B,T,V), hidden (B,T,H), rnn_out (B,T,H))."""
    B, T = tokens.shape
    E = p['emb'].shape[1]
    H = p['wh'].shape[0]
    V = p['wlm'].shape[1]

    # Pad batch to >= 8 sublanes so the serial h@Wh matmul has a full LHS tile.
    Bp = max(8, _round_up(B, 8))

    # Embedding gather (glue), written time-major -> no activation transpose
    # feeding the recurrence.  Padded batch rows are zero and stay isolated.
    x_tbe = jnp.take(p['emb'], tokens.T, axis=0)             # (T, B, E)
    if Bp != B:
        x_tbe = jnp.pad(x_tbe, ((0, 0), (0, Bp - B), (0, 0)))
    x2d = x_tbe.reshape(T * Bp, E)

    # Kernel 1: input projection, off the serial path.
    u2d = run_tiled_linear(x2d, p['wi'], p['bih'])           # (T*Bp, H)
    u = u2d.reshape(T, Bp, H)

    # Kernel 2: serial recurrence, gridded over T, carry in VMEM scratch.
    hid_tbh = run_recurrence(u, p['wh'])                     # (T, Bp, H)

    # Kernel 3: output projection + causal attention; batch-major outputs.
    hidden_p, rnn_out_p, attn_out_p = run_attention(hid_tbh, p)   # (Bp, T, *)

    # Kernel 4: LM head, tiled over (Bp*T rows) x vocab columns.
    logits2d = run_tiled_linear(attn_out_p.reshape(Bp * T, H),
                                p['wlm'], p['blm'])
    logits_p = logits2d.reshape(Bp, T, V)

    if Bp != B:
        return logits_p[:B], hidden_p[:B], rnn_out_p[:B]
    return logits_p, hidden_p, rnn_out_p


# ----------------------------------------------------------------------------
# Pure-JAX reference (mirrors the PyTorch module) for in-script verification
# ----------------------------------------------------------------------------
def reference_forward(tokens, p):
    x = jnp.take(p['emb'], tokens, axis=0)                   # (B,T,E)
    B, T, _ = x.shape
    H = p['wi'].shape[1]

    def step(h, x_t):
        h_new = jax.nn.relu(x_t @ p['wi'] + p['bi'] + h @ p['wh'] + p['bh'])
        o_t = h_new @ p['wo'] + p['bo']
        return h_new, (h_new, o_t)

    h0 = jnp.zeros((B, H), jnp.float32)
    _, (hid, out) = lax.scan(step, h0, jnp.transpose(x, (1, 0, 2)))
    hidden = jnp.transpose(hid, (1, 0, 2))
    rnn_out = jnp.transpose(out, (1, 0, 2))

    K = p['wq'].shape[1]
    q = (rnn_out @ p['wq'] + p['bq']) / np.sqrt(K)
    k = rnn_out @ p['wk'] + p['bk']
    v = rnn_out @ p['wv'] + p['bv']
    scores = jnp.einsum('btk,bsk->bts', q, k)
    mask = jnp.tril(jnp.ones((T, T), bool))[None]
    scores = jnp.where(mask, scores, -jnp.inf)
    w = jax.nn.softmax(scores, axis=-1)
    attn = jnp.einsum('bts,bsd->btd', w, v)
    out_a = attn @ p['wao'] + p['bao']
    logits = out_a @ p['wlm'] + p['blm']
    return logits, hidden, rnn_out


# ----------------------------------------------------------------------------
# Main
# ----------------------------------------------------------------------------
if __name__ == "__main__":
    B, T = 2, 8
    E, H = 32, 32
    KD, VD = 16, 16
    VOCAB = 64

    key = jax.random.PRNGKey(0)
    ks = jax.random.split(key, 16)

    def w(k, shape, scale=0.1):
        return jax.random.normal(k, shape, jnp.float32) * scale

    params = {
        'emb': w(ks[0], (VOCAB, E), 1.0),
        # RNN cell
        'wi': w(ks[1], (E, H)), 'bi': w(ks[2], (1, H)),
        'wh': w(ks[3], (H, H)), 'bh': w(ks[4], (1, H)),
        # RNN output projection
        'wo': w(ks[5], (H, H)), 'bo': w(ks[6], (1, H)),
        # Attention
        'wq': w(ks[7], (H, KD)), 'bq': w(ks[8], (1, KD)),
        'wk': w(ks[9], (H, KD)), 'bk': w(ks[10], (1, KD)),
        'wv': w(ks[11], (H, VD)), 'bv': w(ks[12], (1, VD)),
        'wao': w(ks[13], (VD, H)), 'bao': w(ks[14], (1, H)),
        # LM head
        'wlm': w(ks[15], (H, VOCAB)),
        'blm': jnp.zeros((1, VOCAB), jnp.float32),
    }
    prep = prepare_params(params)

    tokens = jax.random.randint(jax.random.PRNGKey(42), (B, T), 0, VOCAB,
                                dtype=jnp.int32)

    fwd = jax.jit(rnn_language_model_forward)
    logits, hidden, rnn_out = fwd(tokens, prep)
    jax.block_until_ready((logits, hidden, rnn_out))

    # Verify against the pure-JAX reference.
    ref_logits, ref_hidden, ref_out = reference_forward(tokens, params)
    np.testing.assert_allclose(np.asarray(hidden), np.asarray(ref_hidden),
                               rtol=1e-4, atol=1e-4)
    np.testing.assert_allclose(np.asarray(rnn_out), np.asarray(ref_out),
                               rtol=1e-4, atol=1e-4)
    np.testing.assert_allclose(np.asarray(logits), np.asarray(ref_logits),
                               rtol=5e-4, atol=5e-4)

    assert logits.shape == (B, T, VOCAB)
    assert hidden.shape == (B, T, H)
    assert rnn_out.shape == (B, T, H)
    print("KERNEL_OK")
</pallas_src>

<mosaic_0001>
module attributes {stable_mosaic.version = 11 : i64} {
  func.func @linear_kernel(%arg0: i32, %arg1: i32, %arg2: memref<64x32xf32, #tpu.memory_space<vmem>>, %arg3: memref<32x64xf32, #tpu.memory_space<vmem>>, %arg4: memref<1x64xf32, #tpu.memory_space<vmem>>, %arg5: memref<64x64xf32, #tpu.memory_space<vmem>>) attributes {dimension_semantics = [#tpu.dimension_semantics<parallel>, #tpu.dimension_semantics<parallel>], iteration_bounds = array<i64: 1, 1>, scalar_prefetch = 0 : i64, scratch_operands = 0 : i64, tpu.core_type = #tpu.core_type<tc>, window_params = [{transform_indices = @transform_0, window_bounds = array<i64: 64, 32>}, {transform_indices = @transform_1, window_bounds = array<i64: 32, 64>}, {transform_indices = @transform_2, window_bounds = array<i64: 1, 64>}, {transform_indices = @transform_3, window_bounds = array<i64: 64, 64>}]} {
    %c0 = arith.constant 0 : index
    %c0_0 = arith.constant 0 : index
    %0 = vector.load %arg2[%c0, %c0_0] : memref<64x32xf32, #tpu.memory_space<vmem>>, vector<64x32xf32>
    %c0_1 = arith.constant 0 : index
    %c0_2 = arith.constant 0 : index
    %1 = vector.load %arg3[%c0_1, %c0_2] : memref<32x64xf32, #tpu.memory_space<vmem>>, vector<32x64xf32>
    %cst = arith.constant dense<0.000000e+00> : vector<64x64xf32>
    %2 = tpu.matmul %0, %1, %cst {dimension_numbers = #tpu.dot_dimension_numbers<[1], [0], [0], [1], [0, 0, 1, 1], [], []>} : vector<64x32xf32>, vector<32x64xf32>, vector<64x64xf32> -> vector<64x64xf32>
    %c0_3 = arith.constant 0 : index
    %c0_4 = arith.constant 0 : index
    %3 = vector.load %arg4[%c0_3, %c0_4] : memref<1x64xf32, #tpu.memory_space<vmem>>, vector<1x64xf32>
    %4 = vector.broadcast %3 : vector<1x64xf32> to vector<64x64xf32>
    %5 = arith.addf %2, %4 : vector<64x64xf32>
    %c0_5 = arith.constant 0 : index
    %c0_6 = arith.constant 0 : index
    %6 = vector.load %arg5[%c0_5, %c0_6] : memref<64x64xf32, #tpu.memory_space<vmem>>, vector<64x64xf32>
    tpu.vector_store %arg5[%c0_5, %c0_6], %5 {strides = array<i32>} : memref<64x64xf32, #tpu.memory_space<vmem>>, vector<64x64xf32>,
    return
  }
  func.func @transform_0(%arg0: i32, %arg1: i32) -> (i32, i32) {
    %c0_i32 = arith.constant 0 : i32
    %c0_i32_0 = arith.constant 0 : i32
    return %arg0, %c0_i32 : i32, i32
  }
  func.func @transform_1(%arg0: i32, %arg1: i32) -> (i32, i32) {
    %c0_i32 = arith.constant 0 : i32
    %c0_i32_0 = arith.constant 0 : i32
    return %c0_i32, %arg1 : i32, i32
  }
  func.func @transform_2(%arg0: i32, %arg1: i32) -> (i32, i32) {
    %c0_i32 = arith.constant 0 : i32
    %c0_i32_0 = arith.constant 0 : i32
    return %c0_i32, %arg1 : i32, i32
  }
  func.func @transform_3(%arg0: i32, %arg1: i32) -> (i32, i32) {
    %c0_i32 = arith.constant 0 : i32
    return %arg0, %arg1 : i32, i32
  }
}

module attributes {stable_mosaic.version = 11 : i64} {
  func.func @linear_kernel(%arg0: i32, %arg1: i32, %arg2: memref<64x32xf32, #tpu.memory_space<vmem>>, %arg3: memref<32x32xf32, #tpu.memory_space<vmem>>, %arg4: memref<1x32xf32, #tpu.memory_space<vmem>>, %arg5: memref<64x32xf32, #tpu.memory_space<vmem>>) attributes {dimension_semantics = [#tpu.dimension_semantics<parallel>, #tpu.dimension_semantics<parallel>], iteration_bounds = array<i64: 1, 1>, scalar_prefetch = 0 : i64, scratch_operands = 0 : i64, tpu.core_type = #tpu.core_type<tc>, window_params = [{transform_indices = @transform_0, window_bounds = array<i64: 64, 32>}, {transform_indices = @transform_1, window_bounds = array<i64: 32, 32>}, {transform_indices = @transform_2, window_bounds = array<i64: 1, 32>}, {transform_indices = @transform_3, window_bounds = array<i64: 64, 32>}]} {
    %c0 = arith.constant 0 : index
    %c0_0 = arith.constant 0 : index
    %0 = vector.load %arg2[%c0, %c0_0] : memref<64x32xf32, #tpu.memory_space<vmem>>, vector<64x32xf32>
    %c0_1 = arith.constant 0 : index
    %c0_2 = arith.constant 0 : index
    %1 = vector.load %arg3[%c0_1, %c0_2] : memref<32x32xf32, #tpu.memory_space<vmem>>, vector<32x32xf32>
    %cst = arith.constant dense<0.000000e+00> : vector<64x32xf32>
    %2 = tpu.matmul %0, %1, %cst {dimension_numbers = #tpu.dot_dimension_numbers<[1], [0], [0], [1], [0, 0, 1, 1], [], []>} : vector<64x32xf32>, vector<32x32xf32>, vector<64x32xf32> -> vector<64x32xf32>
    %c0_3 = arith.constant 0 : index
    %c0_4 = arith.constant 0 : index
    %3 = vector.load %arg4[%c0_3, %c0_4] : memref<1x32xf32, #tpu.memory_space<vmem>>, vector<1x32xf32>
    %4 = vector.broadcast %3 : vector<1x32xf32> to vector<64x32xf32>
    %5 = arith.addf %2, %4 : vector<64x32xf32>
    %c0_5 = arith.constant 0 : index
    %c0_6 = arith.constant 0 : index
    %6 = vector.load %arg5[%c0_5, %c0_6] : memref<64x32xf32, #tpu.memory_space<vmem>>, vector<64x32xf32>
    tpu.vector_store %arg5[%c0_5, %c0_6], %5 {strides = array<i32>} : memref<64x32xf32, #tpu.memory_space<vmem>>, vector<64x32xf32>,
    return
  }
  func.func @transform_0(%arg0: i32, %arg1: i32) -> (i32, i32) {
    %c0_i32 = arith.constant 0 : i32
    %c0_i32_0 = arith.constant 0 : i32
    return %arg0, %c0_i32 : i32, i32
  }
  func.func @transform_1(%arg0: i32, %arg1: i32) -> (i32, i32) {
    %c0_i32 = arith.constant 0 : i32
    %c0_i32_0 = arith.constant 0 : i32
    return %c0_i32, %arg1 : i32, i32
  }
  func.func @transform_2(%arg0: i32, %arg1: i32) -> (i32, i32) {
    %c0_i32 = arith.constant 0 : i32
    %c0_i32_0 = arith.constant 0 : i32
    return %c0_i32, %arg1 : i32, i32
  }
  func.func @transform_3(%arg0: i32, %arg1: i32) -> (i32, i32) {
    %c0_i32 = arith.constant 0 : i32
    return %arg0, %arg1 : i32, i32
  }
}

module attributes {stable_mosaic.version = 11 : i64} {
  func.func @attn_kernel(%arg0: i32, %arg1: memref<8x8x32xf32, #tpu.memory_space<vmem>>, %arg2: memref<32x32xf32, #tpu.memory_space<vmem>>, %arg3: memref<1x32xf32, #tpu.memory_space<vmem>>, %arg4: memref<32x16xf32, #tpu.memory_space<vmem>>, %arg5: memref<1x16xf32, #tpu.memory_space<vmem>>, %arg6: memref<32x16xf32, #tpu.memory_space<vmem>>, %arg7: memref<1x16xf32, #tpu.memory_space<vmem>>, %arg8: memref<32x16xf32, #tpu.memory_space<vmem>>, %arg9: memref<1x16xf32, #tpu.memory_space<vmem>>, %arg10: memref<16x32xf32, #tpu.memory_space<vmem>>, %arg11: memref<1x32xf32, #tpu.memory_space<vmem>>, %arg12: memref<8x8x32xf32, #tpu.memory_space<vmem>>, %arg13: memref<8x8x32xf32, #tpu.memory_space<vmem>>, %arg14: memref<8x8x32xf32, #tpu.memory_space<vmem>>) attributes {dimension_semantics = [#tpu.dimension_semantics<parallel>], iteration_bounds = array<i64: 1>, scalar_prefetch = 0 : i64, scratch_operands = 0 : i64, tpu.core_type = #tpu.core_type<tc>, window_params = [{transform_indices = @transform_0, window_bounds = array<i64: 8, 8, 32>}, {pipeline_mode = #tpu.pipeline_mode<synchronous>, transform_indices = @transform_1, window_bounds = array<i64: 32, 32>}, {pipeline_mode = #tpu.pipeline_mode<synchronous>, transform_indices = @transform_2, window_bounds = array<i64: 1, 32>}, {pipeline_mode = #tpu.pipeline_mode<synchronous>, transform_indices = @transform_3, window_bounds = array<i64: 32, 16>}, {pipeline_mode = #tpu.pipeline_mode<synchronous>, transform_indices = @transform_4, window_bounds = array<i64: 1, 16>}, {pipeline_mode = #tpu.pipeline_mode<synchronous>, transform_indices = @transform_5, window_bounds = array<i64: 32, 16>}, {pipeline_mode = #tpu.pipeline_mode<synchronous>, transform_indices = @transform_6, window_bounds = array<i64: 1, 16>}, {pipeline_mode = #tpu.pipeline_mode<synchronous>, transform_indices = @transform_7, window_bounds = array<i64: 32, 16>}, {pipeline_mode = #tpu.pipeline_mode<synchronous>, transform_indices = @transform_8, window_bounds = array<i64: 1, 16>}, {pipeline_mode = #tpu.pipeline_mode<synchronous>, transform_indices = @transform_9, window_bounds = array<i64: 16, 32>}, {pipeline_mode = #tpu.pipeline_mode<synchronous>, transform_indices = @transform_10, window_bounds = array<i64: 1, 32>}, {transform_indices = @transform_11, window_bounds = array<i64: 8, 8, 32>}, {transform_indices = @transform_12, window_bounds = array<i64: 8, 8, 32>}, {transform_indices = @transform_13, window_bounds = array<i64: 8, 8, 32>}]} {
    %c0 = arith.constant 0 : index
    %c0_0 = arith.constant 0 : index
    %c0_1 = arith.constant 0 : index
    %0 = vector.load %arg1[%c0, %c0_0, %c0_1] : memref<8x8x32xf32, #tpu.memory_space<vmem>>, vector<8x8x32xf32>
    %1 = tpu.transpose %0, [1, 0, 2] : vector<8x8x32xf32> -> vector<8x8x32xf32>
    %c0_2 = arith.constant 0 : index
    %c0_3 = arith.constant 0 : index
    %c0_4 = arith.constant 0 : index
    %2 = vector.load %arg12[%c0_2, %c0_3, %c0_4] : memref<8x8x32xf32, #tpu.memory_space<vmem>>, vector<8x8x32xf32>
    tpu.vector_store %arg12[%c0_2, %c0_3, %c0_4], %1 {strides = array<i32>} : memref<8x8x32xf32, #tpu.memory_space<vmem>>, vector<8x8x32xf32>,
    %3 = vector.shape_cast %1 : vector<8x8x32xf32> to vector<64x32xf32>
    %c0_5 = arith.constant 0 : index
    %c0_6 = arith.constant 0 : index
    %4 = vector.load %arg2[%c0_5, %c0_6] : memref<32x32xf32, #tpu.memory_space<vmem>>, vector<32x32xf32>
    %cst = arith.constant dense<0.000000e+00> : vector<64x32xf32>
    %5 = tpu.matmul %3, %4, %cst {dimension_numbers = #tpu.dot_dimension_numbers<[1], [0], [0], [1], [0, 0, 1, 1], [], []>} : vector<64x32xf32>, vector<32x32xf32>, vector<64x32xf32> -> vector<64x32xf32>
    %c0_7 = arith.constant 0 : index
    %c0_8 = arith.constant 0 : index
    %6 = vector.load %arg3[%c0_7, %c0_8] : memref<1x32xf32, #tpu.memory_space<vmem>>, vector<1x32xf32>
    %7 = vector.broadcast %6 : vector<1x32xf32> to vector<64x32xf32>
    %8 = arith.addf %5, %7 : vector<64x32xf32>
    %9 = vector.shape_cast %8 : vector<64x32xf32> to vector<8x8x32xf32>
    %c0_9 = arith.constant 0 : index
    %c0_10 = arith.constant 0 : index
    %c0_11 = arith.constant 0 : index
    %10 = vector.load %arg13[%c0_9, %c0_10, %c0_11] : memref<8x8x32xf32, #tpu.memory_space<vmem>>, vector<8x8x32xf32>
    tpu.vector_store %arg13[%c0_9, %c0_10, %c0_11], %9 {strides = array<i32>} : memref<8x8x32xf32, #tpu.memory_space<vmem>>, vector<8x8x32xf32>,
    %c0_12 = arith.constant 0 : index
    %c0_13 = arith.constant 0 : index
    %11 = vector.load %arg4[%c0_12, %c0_13] : memref<32x16xf32, #tpu.memory_space<vmem>>, vector<32x16xf32>
    %cst_14 = arith.constant dense<0.000000e+00> : vector<64x16xf32>
    %12 = tpu.matmul %8, %11, %cst_14 {dimension_numbers = #tpu.dot_dimension_numbers<[1], [0], [0], [1], [0, 0, 1, 1], [], []>} : vector<64x32xf32>, vector<32x16xf32>, vector<64x16xf32> -> vector<64x16xf32>
    %c0_15 = arith.constant 0 : index
    %c0_16 = arith.constant 0 : index
    %13 = vector.load %arg5[%c0_15, %c0_16] : memref<1x16xf32, #tpu.memory_space<vmem>>, vector<1x16xf32>
    %14 = vector.broadcast %13 : vector<1x16xf32> to vector<64x16xf32>
    %15 = arith.addf %12, %14 : vector<64x16xf32>
    %c0_17 = arith.constant 0 : index
    %c0_18 = arith.constant 0 : index
    %16 = vector.load %arg6[%c0_17, %c0_18] : memref<32x16xf32, #tpu.memory_space<vmem>>, vector<32x16xf32>
    %cst_19 = arith.constant dense<0.000000e+00> : vector<64x16xf32>
    %17 = tpu.matmul %8, %16, %cst_19 {dimension_numbers = #tpu.dot_dimension_numbers<[1], [0], [0], [1], [0, 0, 1, 1], [], []>} : vector<64x32xf32>, vector<32x16xf32>, vector<64x16xf32> -> vector<64x16xf32>
    %c0_20 = arith.constant 0 : index
    %c0_21 = arith.constant 0 : index
    %18 = vector.load %arg7[%c0_20, %c0_21] : memref<1x16xf32, #tpu.memory_space<vmem>>, vector<1x16xf32>
    %19 = vector.broadcast %18 : vector<1x16xf32> to vector<64x16xf32>
    %20 = arith.addf %17, %19 : vector<64x16xf32>
    %c0_22 = arith.constant 0 : index
    %c0_23 = arith.constant 0 : index
    %21 = vector.load %arg8[%c0_22, %c0_23] : memref<32x16xf32, #tpu.memory_space<vmem>>, vector<32x16xf32>
    %cst_24 = arith.constant dense<0.000000e+00> : vector<64x16xf32>
    %22 = tpu.matmul %8, %21, %cst_24 {dimension_numbers = #tpu.dot_dimension_numbers<[1], [0], [0], [1], [0, 0, 1, 1], [], []>} : vector<64x32xf32>, vector<32x16xf32>, vector<64x16xf32> -> vector<64x16xf32>
    %c0_25 = arith.constant 0 : index
    %c0_26 = arith.constant 0 : index
    %23 = vector.load %arg9[%c0_25, %c0_26] : memref<1x16xf32, #tpu.memory_space<vmem>>, vector<1x16xf32>
    %24 = vector.broadcast %23 : vector<1x16xf32> to vector<64x16xf32>
    %25 = arith.addf %22, %24 : vector<64x16xf32>
    %26 = vector.shape_cast %15 : vector<64x16xf32> to vector<8x8x16xf32>
    %27 = vector.shape_cast %20 : vector<64x16xf32> to vector<8x8x16xf32>
    %28 = vector.shape_cast %25 : vector<64x16xf32> to vector<8x8x16xf32>
    "tpu.trace_start"() <{level = 10 : i32, message = "btk,bsk->bts"}> : () -> ()
    %cst_27 = arith.constant dense<0.000000e+00> : vector<8x8x8xf32>
    %29 = tpu.matmul %26, %27, %cst_27 {dimension_numbers = #tpu.dot_dimension_numbers<[2], [2], [1], [1], [0, 0, 0, 1, 1, 1], [0], [0]>} : vector<8x8x16xf32>, vector<8x8x16xf32>, vector<8x8x8xf32> -> vector<8x8x8xf32>
    "tpu.trace_stop"() : () -> ()
    %30 = tpu.iota {dimensions = array<i32: 1>} : vector<8x8x8xi32>
    %31 = tpu.iota {dimensions = array<i32: 2>} : vector<8x8x8xi32>
    %32 = arith.cmpi sle, %31, %30 : vector<8x8x8xi32>
    %cst_28 = arith.constant -1.000000e+30 : f32
    %33 = vector.broadcast %cst_28 : f32 to vector<8x8x8xf32>
    %34 = arith.select %32, %29, %33 : vector<8x8x8xi1>, vector<8x8x8xf32>
    %cst_29 = arith.constant dense<0xFF800000> : vector<8x8xf32>
    %35 = vector.multi_reduction <maximumf>, %34, %cst_29 [2] : vector<8x8x8xf32> to vector<8x8xf32>
    %36 = vector.shape_cast %35 : vector<8x8xf32> to vector<8x8x1xf32>
    %37 = vector.broadcast %36 : vector<8x8x1xf32> to vector<8x8x8xf32>
    %38 = arith.subf %34, %37 : vector<8x8x8xf32>
    %39 = math.exp %38 : vector<8x8x8xf32>
    %cst_30 = arith.constant dense<0.000000e+00> : vector<8x8xf32>
    %40 = vector.multi_reduction <add>, %39, %cst_30 [2] : vector<8x8x8xf32> to vector<8x8xf32>
    %41 = vector.shape_cast %40 : vector<8x8xf32> to vector<8x8x1xf32>
    %42 = tpu.reciprocal %41 : vector<8x8x1xf32> -> vector<8x8x1xf32>
    %43 = vector.broadcast %42 : vector<8x8x1xf32> to vector<8x8x8xf32>
    %44 = arith.mulf %39, %43 : vector<8x8x8xf32>
    "tpu.trace_start"() <{level = 10 : i32, message = "bts,bsd->btd"}> : () -> ()
    %cst_31 = arith.constant dense<0.000000e+00> : vector<8x8x16xf32>
    %45 = tpu.matmul %44, %28, %cst_31 {dimension_numbers = #tpu.dot_dimension_numbers<[2], [1], [1], [2], [0, 0, 0, 1, 1, 2], [0], [0]>} : vector<8x8x8xf32>, vector<8x8x16xf32>, vector<8x8x16xf32> -> vector<8x8x16xf32>
    "tpu.trace_stop"() : () -> ()
    %46 = vector.shape_cast %45 : vector<8x8x16xf32> to vector<64x16xf32>
    %c0_32 = arith.constant 0 : index
    %c0_33 = arith.constant 0 : index
    %47 = vector.load %arg10[%c0_32, %c0_33] : memref<16x32xf32, #tpu.memory_space<vmem>>, vector<16x32xf32>
    %cst_34 = arith.constant dense<0.000000e+00> : vector<64x32xf32>
    %48 = tpu.matmul %46, %47, %cst_34 {dimension_numbers = #tpu.dot_dimension_numbers<[1], [0], [0], [1], [0, 0, 1, 1], [], []>} : vector<64x16xf32>, vector<16x32xf32>, vector<64x32xf32> -> vector<64x32xf32>
    %c0_35 = arith.constant 0 : index
    %c0_36 = arith.constant 0 : index
    %49 = vector.load %arg11[%c0_35, %c0_36] : memref<1x32xf32, #tpu.memory_space<vmem>>, vector<1x32xf32>
    %50 = vector.broadcast %49 : vector<1x32xf32> to vector<64x32xf32>
    %51 = arith.addf %48, %50 : vector<64x32xf32>
    %52 = vector.shape_cast %51 : vector<64x32xf32> to vector<8x8x32xf32>
    %c0_37 = arith.constant 0 : index
    %c0_38 = arith.constant 0 : index
    %c0_39 = arith.constant 0 : index
    %53 = vector.load %arg14[%c0_37, %c0_38, %c0_39] : memref<8x8x32xf32, #tpu.memory_space<vmem>>, vector<8x8x32xf32>
    tpu.vector_store %arg14[%c0_37, %c0_38, %c0_39], %52 {strides = array<i32>} : memref<8x8x32xf32, #tpu.memory_space<vmem>>, vector<8x8x32xf32>,
    return
  }
  func.func @transform_0(%arg0: i32) -> (i32, i32, i32) {
    %c0_i32 = arith.constant 0 : i32
    %c0_i32_0 = arith.constant 0 : i32
    %c0_i32_1 = arith.constant 0 : i32
    return %c0_i32, %arg0, %c0_i32_0 : i32, i32, i32
  }
  func.func @transform_1(%arg0: i32) -> (i32, i32) {
    %c0_i32 = arith.constant 0 : i32
    %c0_i32_0 = arith.constant 0 : i32
    %c0_i32_1 = arith.constant 0 : i32
    return %c0_i32, %c0_i32_0 : i32, i32
  }
  func.func @transform_2(%arg0: i32) -> (i32, i32) {
    %c0_i32 = arith.constant 0 : i32
    %c0_i32_0 = arith.constant 0 : i32
    %c0_i32_1 = arith.constant 0 : i32
    return %c0_i32, %c0_i32_0 : i32, i32
  }
  func.func @transform_3(%arg0: i32) -> (i32, i32) {
    %c0_i32 = arith.constant 0 : i32
    %c0_i32_0 = arith.constant 0 : i32
    %c0_i32_1 = arith.constant 0 : i32
    return %c0_i32, %c0_i32_0 : i32, i32
  }
  func.func @transform_4(%arg0: i32) -> (i32, i32) {
    %c0_i32 = arith.constant 0 : i32
    %c0_i32_0 = arith.constant 0 : i32
    %c0_i32_1 = arith.constant 0 : i32
    return %c0_i32, %c0_i32_0 : i32, i32
  }
  func.func @transform_5(%arg0: i32) -> (i32, i32) {
    %c0_i32 = arith.constant 0 : i32
    %c0_i32_0 = arith.constant 0 : i32
    %c0_i32_1 = arith.constant 0 : i32
    return %c0_i32, %c0_i32_0 : i32, i32
  }
  func.func @transform_6(%arg0: i32) -> (i32, i32) {
    %c0_i32 = arith.constant 0 : i32
    %c0_i32_0 = arith.constant 0 : i32
    %c0_i32_1 = arith.constant 0 : i32
    return %c0_i32, %c0_i32_0 : i32, i32
  }
  func.func @transform_7(%arg0: i32) -> (i32, i32) {
    %c0_i32 = arith.constant 0 : i32
    %c0_i32_0 = arith.constant 0 : i32
    %c0_i32_1 = arith.constant 0 : i32
    return %c0_i32, %c0_i32_0 : i32, i32
  }
  func.func @transform_8(%arg0: i32) -> (i32, i32) {
    %c0_i32 = arith.constant 0 : i32
    %c0_i32_0 = arith.constant 0 : i32
    %c0_i32_1 = arith.constant 0 : i32
    return %c0_i32, %c0_i32_0 : i32, i32
  }
  func.func @transform_9(%arg0: i32) -> (i32, i32) {
    %c0_i32 = arith.constant 0 : i32
    %c0_i32_0 = arith.constant 0 : i32
    %c0_i32_1 = arith.constant 0 : i32
    return %c0_i32, %c0_i32_0 : i32, i32
  }
  func.func @transform_10(%arg0: i32) -> (i32, i32) {
    %c0_i32 = arith.constant 0 : i32
    %c0_i32_0 = arith.constant 0 : i32
    %c0_i32_1 = arith.constant 0 : i32
    return %c0_i32, %c0_i32_0 : i32, i32
  }
  func.func @transform_11(%arg0: i32) -> (i32, i32, i32) {
    %c0_i32 = arith.constant 0 : i32
    %c0_i32_0 = arith.constant 0 : i32
    %c0_i32_1 = arith.constant 0 : i32
    return %arg0, %c0_i32, %c0_i32_0 : i32, i32, i32
  }
  func.func @transform_12(%arg0: i32) -> (i32, i32, i32) {
    %c0_i32 = arith.constant 0 : i32
    %c0_i32_0 = arith.constant 0 : i32
    %c0_i32_1 = arith.constant 0 : i32
    return %arg0, %c0_i32, %c0_i32_0 : i32, i32, i32
  }
  func.func @transform_13(%arg0: i32) -> (i32, i32, i32) {
    %c0_i32 = arith.constant 0 : i32
    %c0_i32_0 = arith.constant 0 : i32
    %c0_i32_1 = arith.constant 0 : i32
    return %arg0, %c0_i32, %c0_i32_0 : i32, i32, i32
  }
}

module attributes {stable_mosaic.version = 11 : i64} {
  func.func @rnn_recurrence_kernel(%arg0: i32, %arg1: memref<1x8x32xf32, #tpu.memory_space<vmem>>, %arg2: memref<32x32xf32, #tpu.memory_space<vmem>>, %arg3: memref<1x8x32xf32, #tpu.memory_space<vmem>>, %arg4: memref<8x32xf32, #tpu.memory_space<vmem>>) attributes {dimension_semantics = [#tpu.dimension_semantics<arbitrary>], iteration_bounds = array<i64: 8>, scalar_prefetch = 0 : i64, scratch_operands = 1 : i64, tpu.core_type = #tpu.core_type<tc>, window_params = [{transform_indices = @transform_0, window_bounds = array<i64: 1, 8, 32>}, {pipeline_mode = #tpu.pipeline_mode<synchronous>, transform_indices = @transform_1, window_bounds = array<i64: 32, 32>}, {transform_indices = @transform_2, window_bounds = array<i64: 1, 8, 32>}]} {
    %c0_i32 = arith.constant 0 : i32
    %0 = arith.cmpi eq, %arg0, %c0_i32 : i32
    %1 = arith.extui %0 : i1 to i32
    %c0_i32_0 = arith.constant 0 : i32
    %2 = arith.cmpi ne, %1, %c0_i32_0 : i32
    scf.if %2 {
      %cst_13 = arith.constant 0.000000e+00 : f32
      %15 = vector.broadcast %cst_13 : f32 to vector<8x32xf32>
      %c0_14 = arith.constant 0 : index
      %c0_15 = arith.constant 0 : index
      %16 = vector.load %arg4[%c0_14, %c0_15] : memref<8x32xf32, #tpu.memory_space<vmem>>, vector<8x32xf32>
      tpu.vector_store %arg4[%c0_14, %c0_15], %15 {strides = array<i32>} : memref<8x32xf32, #tpu.memory_space<vmem>>, vector<8x32xf32>,
    } else {
    }
    %c0 = arith.constant 0 : index
    %c0_1 = arith.constant 0 : index
    %c0_2 = arith.constant 0 : index
    %3 = vector.load %arg1[%c0, %c0_1, %c0_2] : memref<1x8x32xf32, #tpu.memory_space<vmem>>, vector<1x8x32xf32>
    %4 = vector.shape_cast %3 : vector<1x8x32xf32> to vector<8x32xf32>
    %c0_3 = arith.constant 0 : index
    %c0_4 = arith.constant 0 : index
    %5 = vector.load %arg4[%c0_3, %c0_4] : memref<8x32xf32, #tpu.memory_space<vmem>>, vector<8x32xf32>
    %c0_5 = arith.constant 0 : index
    %c0_6 = arith.constant 0 : index
    %6 = vector.load %arg2[%c0_5, %c0_6] : memref<32x32xf32, #tpu.memory_space<vmem>>, vector<32x32xf32>
    %cst = arith.constant dense<0.000000e+00> : vector<8x32xf32>
    %7 = tpu.matmul %5, %6, %cst {dimension_numbers = #tpu.dot_dimension_numbers<[1], [0], [0], [1], [0, 0, 1, 1], [], []>} : vector<8x32xf32>, vector<32x32xf32>, vector<8x32xf32> -> vector<8x32xf32>
    %8 = arith.addf %4, %7 : vector<8x32xf32>
    %cst_7 = arith.constant 0.000000e+00 : f32
    %9 = vector.broadcast %cst_7 : f32 to vector<8x32xf32>
    %10 = arith.maximumf %8, %9 : vector<8x32xf32>
    %c0_8 = arith.constant 0 : index
    %c0_9 = arith.constant 0 : index
    %11 = vector.load %arg4[%c0_8, %c0_9] : memref<8x32xf32, #tpu.memory_space<vmem>>, vector<8x32xf32>
    tpu.vector_store %arg4[%c0_8, %c0_9], %10 {strides = array<i32>} : memref<8x32xf32, #tpu.memory_space<vmem>>, vector<8x32xf32>,
    %c0_10 = arith.constant 0 : index
    %c0_11 = arith.constant 0 : index
    %c0_12 = arith.constant 0 : index
    %12 = vector.load %arg3[%c0_10, %c0_11, %c0_12] : memref<1x8x32xf32, #tpu.memory_space<vmem>>, vector<1x8x32xf32>
    %13 = vector.shape_cast %12 : vector<1x8x32xf32> to vector<8x32xf32>
    %14 = vector.shape_cast %10 : vector<8x32xf32> to vector<1x8x32xf32>
    tpu.vector_store %arg3[%c0_10, %c0_11, %c0_12], %14 {strides = array<i32>} : memref<1x8x32xf32, #tpu.memory_space<vmem>>, vector<1x8x32xf32>,
    return
  }
  func.func @transform_0(%arg0: i32) -> (i32, i32, i32) {
    %c0_i32 = arith.constant 0 : i32
    %c0_i32_0 = arith.constant 0 : i32
    %c0_i32_1 = arith.constant 0 : i32
    return %arg0, %c0_i32, %c0_i32_0 : i32, i32, i32
  }
  func.func @transform_1(%arg0: i32) -> (i32, i32) {
    %c0_i32 = arith.constant 0 : i32
    %c0_i32_0 = arith.constant 0 : i32
    %c0_i32_1 = arith.constant 0 : i32
    return %c0_i32, %c0_i32_0 : i32, i32
  }
  func.func @transform_2(%arg0: i32) -> (i32, i32, i32) {
    %c0_i32 = arith.constant 0 : i32
    %c0_i32_0 = arith.constant 0 : i32
    %c0_i32_1 = arith.constant 0 : i32
    return %arg0, %c0_i32, %c0_i32_0 : i32, i32, i32
  }
}

</mosaic_0001>

<bundles_post_ra>
// kernel: rnn_language_model_forward.7
= control target key start
LH: loop header
LB: loop body
LE: loop exit
PB: predicated region body
PF: predicated region fallthrough
CT: control target
= control target key end

     0   :  { %vm33_vm0 = vcmask 261120   ;;  %vm163_vm1 = vcmask 523264   ;;  %s324_s1 = inlined_call_operand.vmem [shape: f32[32,64], index: 1, kind: input, shape index: {}]   ;;  %s325_s0 = inlined_call_operand.vmem [shape: f32[64,32], index: 0, kind: input, shape index: {}]   ;;  %s326_s2 = inlined_call_operand.vmem [shape: f32[1,64], index: 2, kind: input, shape index: {}]   ;;  %s327_s3 = inlined_call_operand.vmem [shape: f32[64,64], index: 3, kind: output, shape index: {}]  }
   0x1   :  { %v25_v0 = vld [vmem:[%s324_s1 + $0x18] sm:$0xff]  ;;  %v24_v1 = vld [vmem:[%s324_s1 + $0x10] sm:$0xff]  ;;  %v23_v2 = vld [vmem:[%s324_s1 + $0x8] sm:$0xff] }
   0x2   :  { %197 = vmatprep.subr.mxu0 %v25_v0  ;;  %217 = vmatprep.subr.mxu1 %v25_v0  ;;  %v22_v3 = vld [vmem:[%s324_s1] sm:$0xff]  ;;  %v15_v6 = vld [vmem:[%s325_s0 + $0x8] sm:$0xff]  ;;  %v16_v8 = vld [vmem:[%s325_s0 + $0x10] sm:$0xff] }
   0x3   :  { %198 = vmatpush3.msra.mxu0 %v25_v0  ;;  %221 = vmatpush3.msra.mxu1 %v25_v0  ;;  %v14_v4 = vld [vmem:[%s325_s0] sm:$0xff]  ;;  %v19_v7 = vld [vmem:[%s325_s0 + $0x28] sm:$0xff]  ;;  %v20_v9 = vld [vmem:[%s325_s0 + $0x30] sm:$0xff] }
   0x4   :  { %199 = vmatprep.subr.mxu0 %v24_v1  ;;  %218 = vmatprep.subr.mxu1 %v24_v1  ;;  %v18_v5 = vld [vmem:[%s325_s0 + $0x20] sm:$0xff]  ;;  %v17_v10 = vld [vmem:[%s325_s0 + $0x18] sm:$0xff] }
   0x5   :  { %200 = vmatpush3.msra.mxu0 %v24_v1  ;;  %222 = vmatpush3.msra.mxu1 %v24_v1  ;;  %v21_v11 = vld [vmem:[%s325_s0 + $0x38] sm:$0xff]  ;;  %v176_v12 = vld [vmem:[%s326_s2] ss:$0 sm:$0xff] }
   0x6   :  { %201 = vmatprep.subr.mxu0 %v23_v2  ;;  %219 = vmatprep.subr.mxu1 %v23_v2 }
   0x7   :  { %202 = vmatpush3.msra.mxu0 %v23_v2  ;;  %223 = vmatpush3.msra.mxu1 %v23_v2 }
   0x8   :  { %203 = vmatprep.subr.mxu0 %v22_v3  ;;  %220 = vmatprep.subr.mxu1 %v22_v3 }
   0x9   :  { %204 = vmatpush3.msra.mxu0 %v22_v3  ;;  %224 = vmatpush3.msra.mxu1 %v22_v3 }
   0xa   :  { %205 = vmatprep.mubr.msk.f32.mxu0 %vm33_vm0, %v14_v4  ;;  %211 = vmatprep.mubr.msk.f32.mxu1 %vm33_vm0, %v18_v5 }
   0xb   :  { %206 = vmatmul.mubr.msk.f32.vlgmr.msra.gmra.mxu0 %vm33_vm0, %v15_v6  ;;  %212 = vmatmul.mubr.msk.f32.vlgmr.msra.gmra.mxu1 %vm33_vm0, %v19_v7 }
   0xc   :  { %208 = vmatprep.mubr.msk.f32.mxu0 %vm33_vm0, %v16_v8  ;;  %214 = vmatprep.mubr.msk.f32.mxu1 %vm33_vm0, %v20_v9 }
   0xf   :  { %209 = vmatmul.mubr.msk.f32.gmra.mxu0 %vm33_vm0, %v17_v10  ;;  %215 = vmatmul.mubr.msk.f32.gmra.mxu1 %vm33_vm0, %v21_v11 }
  0xcb   :  { %v207_v13 = vpop.f32.mrf.mxu0  ;;  %v213_v14 = vpop.f32.mrf.mxu1 }
  0xcc   :  { %v130_v15 = vadd.f32 %v207_v13, %v176_v12  ;;  %v150_v16 = vadd.f32 %v213_v14, %v176_v12 }
  0xcd   :  { %v124_v17 = vpop.f32.mrf.mxu0  ;;  %v144_v18 = vpop.f32.mrf.mxu1 }
  0xce   :  { %165 = vst.msk [vmem:[%s327_s3 + $0x8] sm:$0xff] %vm163_vm1, %v130_v15  ;;  %169 = vst.msk [vmem:[%s327_s3 + $0x28] sm:$0xff] %vm163_vm1, %v150_v16  ;;  %v125_v19 = vadd.f32 %v176_v12, %v124_v17  ;;  %v145_v20 = vadd.f32 %v176_v12, %v144_v18 }
  0xcf   :  { %v210_v21 = vpop.f32.mrf.mxu0  ;;  %v216_v22 = vpop.f32.mrf.mxu1 }
  0xd0   :  { %164 = vst.msk [vmem:[%s327_s3] sm:$0xff] %vm163_vm1, %v125_v19  ;;  %168 = vst.msk [vmem:[%s327_s3 + $0x20] sm:$0xff] %vm163_vm1, %v145_v20  ;;  %v140_v23 = vadd.f32 %v210_v21, %v176_v12  ;;  %v160_v24 = vadd.f32 %v216_v22, %v176_v12 }
  0xd1   :  { %v134_v25 = vpop.f32.mrf.mxu0  ;;  %v154_v26 = vpop.f32.mrf.mxu1 }
  0xd2   :  { %167 = vst.msk [vmem:[%s327_s3 + $0x18] sm:$0xff] %vm163_vm1, %v140_v23  ;;  %171 = vst.msk [vmem:[%s327_s3 + $0x38] sm:$0xff] %vm163_vm1, %v160_v24  ;;  %v135_v27 = vadd.f32 %v176_v12, %v134_v25  ;;  %v155_v28 = vadd.f32 %v176_v12, %v154_v26 }
  0xd4   :  { %166 = vst.msk [vmem:[%s327_s3 + $0x10] sm:$0xff] %vm163_vm1, %v135_v27  ;;  %170 = vst.msk [vmem:[%s327_s3 + $0x30] sm:$0xff] %vm163_vm1, %v155_v28 }

// kernel: rnn_language_model_forward.4
= control target key start
LH: loop header
LB: loop body
LE: loop exit
PB: predicated region body
PF: predicated region fallthrough
CT: control target
= control target key end

     0   :  { %vm33_vm0 = vcmask 261120   ;;  %s323_s1 = inlined_call_operand.vmem [shape: f32[32,32], index: 1, kind: input, shape index: {}]   ;;  %s324_s0 = inlined_call_operand.vmem [shape: f32[64,32], index: 0, kind: input, shape index: {}]   ;;  %s325_s2 = inlined_call_operand.vmem [shape: f32[1,32], index: 2, kind: input, shape index: {}]   ;;  %s326_s3 = inlined_call_operand.vmem [shape: f32[64,32], index: 3, kind: output, shape index: {}]  }
   0x1   :  { %v25_v0 = vld [vmem:[%s323_s1 + $0x18] sm:$0xff]  ;;  %v24_v1 = vld [vmem:[%s323_s1 + $0x10] sm:$0xff]  ;;  %v23_v2 = vld [vmem:[%s323_s1 + $0x8] sm:$0xff] }
   0x2   :  { %196 = vmatprep.subr.mxu0 %v25_v0  ;;  %216 = vmatprep.subr.mxu1 %v25_v0  ;;  %v22_v3 = vld [vmem:[%s323_s1] sm:$0xff]  ;;  %v15_v6 = vld [vmem:[%s324_s0 + $0x8] sm:$0xff]  ;;  %v16_v8 = vld [vmem:[%s324_s0 + $0x10] sm:$0xff] }
   0x3   :  { %197 = vmatpush3.msra.mxu0 %v25_v0  ;;  %220 = vmatpush3.msra.mxu1 %v25_v0  ;;  %v14_v4 = vld [vmem:[%s324_s0] sm:$0xff]  ;;  %v19_v7 = vld [vmem:[%s324_s0 + $0x28] sm:$0xff]  ;;  %v20_v9 = vld [vmem:[%s324_s0 + $0x30] sm:$0xff] }
   0x4   :  { %198 = vmatprep.subr.mxu0 %v24_v1  ;;  %217 = vmatprep.subr.mxu1 %v24_v1  ;;  %v18_v5 = vld [vmem:[%s324_s0 + $0x20] sm:$0xff]  ;;  %v17_v10 = vld [vmem:[%s324_s0 + $0x18] sm:$0xff] }
   0x5   :  { %199 = vmatpush3.msra.mxu0 %v24_v1  ;;  %221 = vmatpush3.msra.mxu1 %v24_v1  ;;  %v21_v11 = vld [vmem:[%s324_s0 + $0x38] sm:$0xff]  ;;  %v175_v12 = vld [vmem:[%s325_s2] ss:$0 sm:$0xff] }
   0x6   :  { %200 = vmatprep.subr.mxu0 %v23_v2  ;;  %218 = vmatprep.subr.mxu1 %v23_v2 }
   0x7   :  { %201 = vmatpush3.msra.mxu0 %v23_v2  ;;  %222 = vmatpush3.msra.mxu1 %v23_v2 }
   0x8   :  { %202 = vmatprep.subr.mxu0 %v22_v3  ;;  %219 = vmatprep.subr.mxu1 %v22_v3 }
   0x9   :  { %203 = vmatpush3.msra.mxu0 %v22_v3  ;;  %223 = vmatpush3.msra.mxu1 %v22_v3 }
   0xa   :  { %204 = vmatprep.mubr.msk.f32.mxu0 %vm33_vm0, %v14_v4  ;;  %210 = vmatprep.mubr.msk.f32.mxu1 %vm33_vm0, %v18_v5 }
   0xb   :  { %205 = vmatmul.mubr.msk.f32.vlgmr.msra.gmra.mxu0 %vm33_vm0, %v15_v6  ;;  %211 = vmatmul.mubr.msk.f32.vlgmr.msra.gmra.mxu1 %vm33_vm0, %v19_v7 }
   0xc   :  { %207 = vmatprep.mubr.msk.f32.mxu0 %vm33_vm0, %v16_v8  ;;  %213 = vmatprep.mubr.msk.f32.mxu1 %vm33_vm0, %v20_v9 }
   0xf   :  { %208 = vmatmul.mubr.msk.f32.gmra.mxu0 %vm33_vm0, %v17_v10  ;;  %214 = vmatmul.mubr.msk.f32.gmra.mxu1 %vm33_vm0, %v21_v11 }
  0xcb   :  { %v206_v13 = vpop.f32.mrf.mxu0  ;;  %v212_v14 = vpop.f32.mrf.mxu1 }
  0xcc   :  { %v130_v15 = vadd.f32 %v206_v13, %v175_v12  ;;  %v150_v16 = vadd.f32 %v212_v14, %v175_v12 }
  0xcd   :  { %v124_v17 = vpop.f32.mrf.mxu0  ;;  %v144_v18 = vpop.f32.mrf.mxu1 }
  0xce   :  { %164 = vst.msk [vmem:[%s326_s3 + $0x8] sm:$0xff] %vm33_vm0, %v130_v15  ;;  %168 = vst.msk [vmem:[%s326_s3 + $0x28] sm:$0xff] %vm33_vm0, %v150_v16  ;;  %v125_v19 = vadd.f32 %v175_v12, %v124_v17  ;;  %v145_v20 = vadd.f32 %v175_v12, %v144_v18 }
  0xcf   :  { %v209_v21 = vpop.f32.mrf.mxu0  ;;  %v215_v22 = vpop.f32.mrf.mxu1 }
  0xd0   :  { %163 = vst.msk [vmem:[%s326_s3] sm:$0xff] %vm33_vm0, %v125_v19  ;;  %167 = vst.msk [vmem:[%s326_s3 + $0x20] sm:$0xff] %vm33_vm0, %v145_v20  ;;  %v140_v23 = vadd.f32 %v209_v21, %v175_v12  ;;  %v160_v24 = vadd.f32 %v215_v22, %v175_v12 }
  0xd1   :  { %v134_v25 = vpop.f32.mrf.mxu0  ;;  %v154_v26 = vpop.f32.mrf.mxu1 }
  0xd2   :  { %166 = vst.msk [vmem:[%s326_s3 + $0x18] sm:$0xff] %vm33_vm0, %v140_v23  ;;  %170 = vst.msk [vmem:[%s326_s3 + $0x38] sm:$0xff] %vm33_vm0, %v160_v24  ;;  %v135_v27 = vadd.f32 %v175_v12, %v134_v25  ;;  %v155_v28 = vadd.f32 %v175_v12, %v154_v26 }
  0xd4   :  { %165 = vst.msk [vmem:[%s326_s3 + $0x10] sm:$0xff] %vm33_vm0, %v135_v27  ;;  %169 = vst.msk [vmem:[%s326_s3 + $0x30] sm:$0xff] %vm33_vm0, %v155_v28 }

// kernel: rnn_language_model_forward.5
= control target key start
LH: loop header
LB: loop body
LE: loop exit
PB: predicated region body
PF: predicated region fallthrough
CT: control target
= control target key end

     0   :  { %s346_s9 = smov 0   ;;  %s378_s0 = inlined_call_operand.vmem [shape: f32[8,8,32], index: 0, kind: input, shape index: {}]   ;;  %s379_s1 = inlined_call_operand.vmem [shape: f32[32,32], index: 1, kind: input, shape index: {}]   ;;  %s380_s2 = inlined_call_operand.vmem [shape: f32[8,8,32], index: 2, kind: output, shape index: {}]  }
   0x1 LB: > { %s282_s10 = sadd.s32 4294967295, %s326_s9   ;;  %p286_p0 = scmp.ge.s32.totalorder %s326_s9, 1  ;;  %s326_s9 = sphi %s346_s9, %s12_s9  }
   0x2   : > { %p111_p1 = scmp.lt.s32.totalorder %s326_s9, 9 }
   0x4   : > { %p112_p2 = pnand %p286_p0, %p111_p1 }
   0x5   : > { %p131_p3 = scmp.lt.s32.totalorder (!%p112_p2), %s282_s10, 7  ;;  %p289_p4 = scmp.ne.s32.totalorder (!%p112_p2), %s282_s10, 0 }
   0x6   : > { %115 = sbr.rel (%p112_p2) target bundleno = 226 (0xe2), region = 28 }
   0xb   : > { %s132_s11 = scalar_select %p131_p3, %s282_s10, 7 }
   0xc   : > { %142 = sbr.rel (%p289_p4) target bundleno = 19 (0x13), region = 32 }
   0xd   : > { %s287_s12 = sshll.u32 %s132_s11, 3 }
   0xe   : > { %s134_s15 = scalar_lea.vmem %s378_s0, %s287_s12  ;;  %s360_s18 = scalar_lea.vmem %s380_s2, %s287_s12 }
  0x11   : > { %vm143_vm0 = vcmask 261120   ;;  %v328_v0 = vmov 0.0  }
  0x12   : > { %144 = vst.msk [vmem:[#allocation2] sm:$0xff] %vm143_vm0, %v328_v0 }
  0x13 PF: > { %v150_v1 = vld [vmem:[%s379_s1 + $0x18] sm:$0xff]  ;;  %v329_v2 = vmov 0.0   ;;  %v149_v3 = vld [vmem:[%s379_s1 + $0x10] sm:$0xff]  ;;  %vm330_vm1 = vmmov 0   ;;  %v148_v4 = vld [vmem:[%s379_s1 + $0x8] sm:$0xff]  ;;  %vm151_vm2 = vcmask 261120  }
  0x14   : > { %298 = vmatprep.subr.mxu0 %v329_v2  ;;  %306 = vmatprep.mubr.msk.f32.mxu0 %vm330_vm1, %v329_v2  ;;  %v147_v5 = vld [vmem:[%s379_s1] sm:$0xff] }
  0x15   : > { %299 = vmatpush3.msra.mxu0 %v150_v1  ;;  %v145_v7 = vld [vmem:[%s134_s15] sm:$0xff] }
  0x16   : > { %300 = vmatprep.subr.mxu0 %v329_v2 }
  0x17   : > { %301 = vmatpush3.msra.mxu0 %v149_v3 }
  0x18   : > { %302 = vmatprep.subr.mxu0 %v329_v2 }
  0x19   : > { %303 = vmatpush3.msra.mxu0 %v148_v4  ;;  %v146_v6 = vld [vmem:[#allocation2] sm:$0xff] }
  0x1a   : > { %304 = vmatprep.subr.mxu0 %v329_v2 }
  0x1b   : > { %305 = vmatpush3.msra.mxu0 %v147_v5 }
  0x1c   : > { %307 = vmatmul.mubr.msk.f32.vlgmr.msra.gmra.mxu0 %vm151_vm2, %v146_v6 }
  0xdc   : > { %v221_v8 = vpop.f32.mrf.mxu0 }
  0xdd   : > { %v225_v9 = vadd.f32 %v221_v8, %v145_v7 }
  0xde   : > { %v308_v10 = vpop.f32.mrf.mxu0 }
  0xdf   : > { %v226_v11 = vmax.f32 %v225_v9, 0.0 }
  0xe1   : > { %227 = vst.msk [vmem:[#allocation2] sm:$0xff] %vm151_vm2, %v226_v11  ;;  %228 = vst.msk [vmem:[%s360_s18] sm:$0xff] %vm151_vm2, %v226_v11 }
  0xe2 PF: > { %s12_s9 = sadd.s32 1, %s326_s9  }
  0xe3   : > { %p9_p5 = scmp.ge.s32.totalorder %s12_s9, 10  }
  0xe5   :  { %11 = sbr.rel (!%p9_p5) target bundleno = 1 (0x1), region = 62 }

// kernel: rnn_language_model_forward.6
= control target key start
LH: loop header
LB: loop body
LE: loop exit
PB: predicated region body
PF: predicated region fallthrough
CT: control target
= control target key end

     0   :  { %v54_v0 = vlaneseq  ;;  %v2554_v3 = vmov 1983009808   ;;  %v2555_v5 = vmov 1934713408   ;;  %vm185_vm0 = vcmask 261120   ;;  %s3012_s1 = inlined_call_operand.vmem [shape: f32[32,32], index: 1, kind: input, shape index: {}]   ;;  %s3013_s0 = inlined_call_operand.vmem [shape: f32[8,8,32], index: 0, kind: input, shape index: {}]   ;;  %s3014_s3 = inlined_call_operand.vmem [shape: f32[32,16], index: 3, kind: input, shape index: {}]   ;;  %s3015_s5 = inlined_call_operand.vmem [shape: f32[32,16], index: 5, kind: input, shape index: {}]   ;;  %s3016_s11 = inlined_call_operand.vmem [shape: f32[8,8,32], index: 11, kind: output, shape index: {0}]   ;;  %s3017_s7 = inlined_call_operand.vmem [shape: f32[32,16], index: 7, kind: input, shape index: {}]   ;;  %s3018_s2 = inlined_call_operand.vmem [shape: f32[1,32], index: 2, kind: input, shape index: {}]   ;;  %s3019_s12 = inlined_call_operand.vmem [shape: f32[8,8,32], index: 12, kind: output, shape index: {1}]   ;;  %s3020_s6 = inlined_call_operand.vmem [shape: f32[1,16], index: 6, kind: input, shape index: {}]   ;;  %s3021_s4 = inlined_call_operand.vmem [shape: f32[1,16], index: 4, kind: input, shape index: {}]   ;;  %s3022_s8 = inlined_call_operand.vmem [shape: f32[1,16], index: 8, kind: input, shape index: {}]   ;;  %s3023_s9 = inlined_call_operand.vmem [shape: f32[16,32], index: 9, kind: input, shape index: {}]   ;;  %s3024_s10 = inlined_call_operand.vmem [shape: f32[1,32], index: 10, kind: input, shape index: {}]   ;;  %s3025_s13 = inlined_call_operand.vmem [shape: f32[8,8,32], index: 13, kind: output, shape index: {2}]  }
   0x1   :  { %v197_v1 = vld [vmem:[%s3012_s1 + $0x18] sm:$0xff]  ;;  %v196_v2 = vld [vmem:[%s3012_s1 + $0x10] sm:$0xff]  ;;  %v52_v4 = vunpack.c.l.s4 %v2554_v3  ;;  %v116_v6 = vunpack.c.l.s4 %v2555_v5  ;;  %v195_v7 = vld [vmem:[%s3012_s1 + $0x8] sm:$0xff]  ;;  %vm2557_vm1 = vmmov 0   ;;  %vm714_vm2 = vcmask 130048  }
   0x2   :  { %2326 = vmatprep.subr.mxu0 %v197_v1  ;;  %v41_v8 = vld [vmem:[%s3013_s0] sm:$0xff]  ;;  %v42_v9 = vld [vmem:[%s3013_s0 + $0x8] sm:$0xff]  ;;  %v2644_v10 = vshrl.u32 %v54_v0, 7  ;;  %2502 = vmatprep.subr.mxu1 %v197_v1  ;;  %v43_v12 = vld [vmem:[%s3013_s0 + $0x10] sm:$0xff]  ;;  %vm1336_vm4 = vcmask 64512  }
   0x3   :  { %2327 = vmatpush3.msra.mxu0 %v197_v1  ;;  %v194_v11 = vld [vmem:[%s3012_s1] sm:$0xff]  ;;  %v44_v13 = vld [vmem:[%s3013_s0 + $0x18] sm:$0xff]  ;;  %v53_v15 = vunpack.c.0.s8 %v52_v4  ;;  %v117_v16 = vunpack.c.0.s8 %v116_v6  ;;  %2506 = vmatpush3.msra.mxu1 %v197_v1  ;;  %v46_v17 = vld [vmem:[%s3013_s0 + $0x28] sm:$0xff]  ;;  %v50_v20 = vcombine.high %v41_v8, %v43_v12 }
   0x4   :  { %v45_v14 = vld [vmem:[%s3013_s0 + $0x20] sm:$0xff]  ;;  %2328 = vmatprep.subr.mxu0 %v196_v2  ;;  %v47_v18 = vld [vmem:[%s3013_s0 + $0x30] sm:$0xff]  ;;  %v48_v19 = vld [vmem:[%s3013_s0 + $0x38] sm:$0xff]  ;;  %2503 = vmatprep.subr.mxu1 %v196_v2  ;;  %v66_v21 = vcombine.high %v42_v9, %v44_v13 }
   0x5   :  { %2329 = vmatpush3.msra.mxu0 %v196_v2  ;;  %v2514_v22 = vld [vmem:[%s3013_s0] ss:$16 sps:$4 sm:$0xff]   ;;  %v56_v23 = vsub.s32 %v53_v15, %v2644_v10  ;;  %v2516_v24 = vld [vmem:[%s3013_s0 + $0x8] ss:$16 sps:$4 sm:$0xff]   ;;  %2507 = vmatpush3.msra.mxu1 %v196_v2  ;;  %v82_v26 = vcombine.high %v45_v14, %v47_v18  ;;  %v120_v28 = vsub.s32 %v117_v16, %v2644_v10 }
   0x6   :  { %v2518_v25 = vld [vmem:[%s3013_s0 + $0x20] ss:$16 sps:$4 sm:$0xff]   ;;  %2330 = vmatprep.subr.mxu0 %v195_v7  ;;  %v2520_v27 = vld [vmem:[%s3013_s0 + $0x28] ss:$16 sps:$4 sm:$0xff]   ;;  %2504 = vmatprep.subr.mxu1 %v195_v7  ;;  %v98_v29 = vcombine.high %v46_v17, %v48_v19 }
   0x7   :  { %2331 = vmatpush3.msra.mxu0 %v195_v7  ;;  %v57_v30 = vrot.slane %v2514_v22, %v56_v23  ;;  %v73_v31 = vrot.slane %v2516_v24, %v56_v23  ;;  %v89_v32 = vrot.slane %v2518_v25, %v56_v23  ;;  %2508 = vmatpush3.msra.mxu1 %v195_v7  ;;  %v345_v33 = vld [vmem:[%s3014_s3 + $0x18] sm:$0xff]  ;;  %v344_v1 = vld [vmem:[%s3014_s3 + $0x10] sm:$0xff]  ;;  %v343_v3 = vld [vmem:[%s3014_s3 + $0x8] sm:$0xff] }
   0x8   :  { %2332 = vmatprep.subr.mxu0 %v194_v11  ;;  %v105_v34 = vrot.slane %v2520_v27, %v56_v23  ;;  %2505 = vmatprep.subr.mxu1 %v194_v11  ;;  %v64_v35 = vrot.slane %v50_v20, %v56_v23  ;;  %v80_v36 = vrot.slane %v66_v21, %v56_v23  ;;  %v485_v37 = vld [vmem:[%s3015_s5 + $0x18] sm:$0xff]  ;;  %v484_v2 = vld [vmem:[%s3015_s5 + $0x10] sm:$0xff]  ;;  %v483_v4 = vld [vmem:[%s3015_s5 + $0x8] sm:$0xff] }
   0x9   :  { %2333 = vmatpush3.msra.mxu0 %v194_v11  ;;  %v113_v38 = vcombine.low %v57_v30, %v73_v31  ;;  %v114_v39 = vcombine.high %v57_v30, %v73_v31  ;;  %2509 = vmatpush3.msra.mxu1 %v194_v11  ;;  %v96_v40 = vrot.slane %v82_v26, %v56_v23  ;;  %v342_v5 = vld [vmem:[%s3014_s3] sm:$0xff]  ;;  %v601_v7 = vld [vmem:[%s3017_s7 + $0x18] sm:$0xff]  ;;  %v600_v19 = vld [vmem:[%s3017_s7 + $0x10] sm:$0xff] }
   0xa   :  { %v145_v41 = vcombine.low %v89_v32, %v105_v34  ;;  %v146_v42 = vcombine.high %v89_v32, %v105_v34  ;;  %v112_v43 = vrot.slane %v98_v29, %v56_v23  ;;  %v129_v44 = vcombine.low %v64_v35, %v80_v36  ;;  %2346 = vmatprep.subr.mxu1 %v345_v33  ;;  %v482_v6 = vld [vmem:[%s3015_s5] sm:$0xff]  ;;  %v599_v27 = vld [vmem:[%s3017_s7 + $0x8] sm:$0xff] }
   0xb   :  { %v121_v45 = vrot.slane %v113_v38, %v120_v28  ;;  %v128_v46 = vrot.slane %v114_v39, %v120_v28  ;;  %v130_v47 = vcombine.high %v64_v35, %v80_v36  ;;  %2366 = vmatprep.subr.mxu0 %v485_v37  ;;  %v2167_v8 = vld [vmem:[%s3018_s2] ss:$0 sm:$0xff]  ;;  %v2556_v29 = vmov 0.0  }
   0xc   :  { %v153_v48 = vrot.slane %v145_v41, %v120_v28  ;;  %v160_v49 = vrot.slane %v146_v42, %v120_v28  ;;  %v161_v50 = vcombine.low %v96_v40, %v112_v43  ;;  %v137_v51 = vrot.slane %v129_v44, %v120_v28  ;;  %v2185_v30 = vld [vmem:[%s3020_s6] ss:$0 sm:$0xff] }
   0xd   :  { %v162_v52 = vcombine.high %v96_v40, %v112_v43  ;;  %v144_v53 = vrot.slane %v130_v47, %v120_v28 }
   0xe   :  { %v177_v54 = vcombine.low %v121_v45, %v153_v48  ;;  %v178_v55 = vcombine.high %v121_v45, %v153_v48  ;;  %v179_v56 = vcombine.low %v128_v46, %v160_v49  ;;  %v180_v57 = vcombine.high %v128_v46, %v160_v49 }
   0xf   :  { %v169_v58 = vrot.slane %v161_v50, %v120_v28  ;;  %v176_v59 = vrot.slane %v162_v52, %v120_v28  ;;  %v598_v28 = vld [vmem:[%s3017_s7] sm:$0xff] }
  0x10   :  { %186 = vst.msk [vmem:[%s3016_s11] sm:$0xff] %vm185_vm0, %v177_v54  ;;  %187 = vst.msk [vmem:[%s3016_s11 + $0x8] sm:$0xff] %vm185_vm0, %v178_v55  ;;  %2334 = vmatprep.mubr.msk.f32.mxu0 %vm185_vm0, %v177_v54 }
  0x11   :  { %188 = vst.msk [vmem:[%s3016_s11 + $0x10] sm:$0xff] %vm185_vm0, %v179_v56  ;;  %189 = vst.msk [vmem:[%s3016_s11 + $0x18] sm:$0xff] %vm185_vm0, %v180_v57  ;;  %2335 = vmatmul.mubr.msk.f32.vlgmr.msra.gmra.mxu0 %vm185_vm0, %v178_v55  ;;  %v181_v60 = vcombine.low %v137_v51, %v169_v58  ;;  %v182_v61 = vcombine.high %v137_v51, %v169_v58  ;;  %v183_v62 = vcombine.low %v144_v53, %v176_v59 }
  0x12   :  { %v184_v63 = vcombine.high %v144_v53, %v176_v59  ;;  %2337 = vmatprep.mubr.msk.f32.mxu0 %vm185_vm0, %v179_v56  ;;  %2367 = vmatpush3.msra.mxu0 %v485_v37 }
  0x13   :  { %190 = vst.msk [vmem:[%s3016_s11 + $0x20] sm:$0xff] %vm185_vm0, %v181_v60  ;;  %191 = vst.msk [vmem:[%s3016_s11 + $0x28] sm:$0xff] %vm185_vm0, %v182_v61  ;;  %2340 = vmatprep.mubr.msk.f32.mxu1 %vm185_vm0, %v181_v60  ;;  %2368 = vmatprep.subr.mxu0 %v484_v2 }
  0x14   :  { %192 = vst.msk [vmem:[%s3016_s11 + $0x30] sm:$0xff] %vm185_vm0, %v183_v62  ;;  %193 = vst.msk [vmem:[%s3016_s11 + $0x38] sm:$0xff] %vm185_vm0, %v184_v63  ;;  %2341 = vmatmul.mubr.msk.f32.vlgmr.msra.gmra.mxu1 %vm185_vm0, %v182_v61  ;;  %2369 = vmatpush3.msra.mxu0 %v484_v2  ;;  %v2855_v61 = vld [vmem:[%s3022_s8] ss:$0 sm:$0xff] }
  0x15   :  { %2338 = vmatmul.mubr.msk.f32.gmra.mxu0 %vm185_vm0, %v180_v57  ;;  %2343 = vmatprep.mubr.msk.f32.mxu1 %vm185_vm0, %v183_v62 }
  0x16   :  { %2347 = vmatpush3.msra.mxu1 %v345_v33  ;;  %2370 = vmatprep.subr.mxu0 %v483_v4  ;;  %v2176_v33 = vld [vmem:[%s3021_s4] ss:$0 sm:$0xff] }
  0x17   :  { %2348 = vmatprep.subr.mxu1 %v344_v1  ;;  %2371 = vmatpush3.msra.mxu0 %v483_v4 }
  0x18   :  { %2344 = vmatmul.mubr.msk.f32.gmra.mxu1 %vm185_vm0, %v184_v63  ;;  %2372 = vmatprep.subr.mxu0 %v482_v6 }
  0x19   :  { %2349 = vmatpush3.msra.mxu1 %v344_v1  ;;  %2373 = vmatpush3.msra.mxu0 %v482_v6 }
  0x1a   :  { %2350 = vmatprep.subr.mxu1 %v343_v3  ;;  %2406 = vmatprep.subr.mxu0 %v2556_v29 }
  0x1b   :  { %2351 = vmatpush3.msra.mxu1 %v343_v3 }
  0x1c   :  { %2352 = vmatprep.subr.mxu1 %v342_v5 }
  0x1d   :  { %2353 = vmatpush3.msra.mxu1 %v342_v5 }
  0x1e   :  { %2386 = vmatprep.subr.mxu1 %v601_v7 }
  0xd1   :  { %v2336_v9 = vpop.f32.mrf.mxu0 }
  0xd2   :  { %v301_v11 = vadd.f32 %v2336_v9, %v2167_v8 }
  0xd3   :  { %v295_v12 = vpop.f32.mrf.mxu0 }
  0xd4   :  { %335 = vst.msk [vmem:[%s3019_s12 + $0x8] sm:$0xff] %vm185_vm0, %v301_v11  ;;  %v296_v13 = vadd.f32 %v2167_v8, %v295_v12  ;;  %v2342_v14 = vpop.f32.mrf.mxu1 }
  0xd5   :  { %v2339_v15 = vpop.f32.mrf.mxu0  ;;  %v321_v16 = vadd.f32 %v2342_v14, %v2167_v8 }
  0xd6   :  { %334 = vst.msk [vmem:[%s3019_s12] sm:$0xff] %vm185_vm0, %v296_v13  ;;  %v311_v17 = vadd.f32 %v2339_v15, %v2167_v8  ;;  %2354 = vmatprep.mubr.msk.f32.mxu1 %vm185_vm0, %v296_v13  ;;  %2374 = vmatprep.mubr.msk.f32.mxu0 %vm185_vm0, %v296_v13  ;;  %v315_v18 = vpop.f32.mrf.mxu1 }
  0xd7   :  { %v305_v20 = vpop.f32.mrf.mxu0  ;;  %2355 = vmatmul.mubr.msk.f32.vlgmr.msra.gmra.mxu1 %vm185_vm0, %v301_v11  ;;  %2375 = vmatmul.mubr.msk.f32.vlgmr.msra.gmra.mxu0 %vm185_vm0, %v301_v11  ;;  %339 = vst.msk [vmem:[%s3019_s12 + $0x28] sm:$0xff] %vm185_vm0, %v321_v16  ;;  %v316_v21 = vadd.f32 %v2167_v8, %v315_v18  ;;  %v1326_v18 = vand.u32 127, %v54_v0 }
  0xd8   :  { %337 = vst.msk [vmem:[%s3019_s12 + $0x18] sm:$0xff] %vm185_vm0, %v311_v17  ;;  %v306_v22 = vadd.f32 %v2167_v8, %v305_v20  ;;  %v2345_v23 = vpop.f32.mrf.mxu1  ;;  %2387 = vmatpush3.msra.mxu1 %v601_v7 }
  0xd9   :  { %338 = vst.msk [vmem:[%s3019_s12 + $0x20] sm:$0xff] %vm185_vm0, %v316_v21  ;;  %v331_v24 = vadd.f32 %v2345_v23, %v2167_v8  ;;  %2388 = vmatprep.subr.mxu1 %v600_v19  ;;  %vm2896_vm3 = vcmp.le.s32.totalorder %v1326_v18, %v2644_v10 }
  0xda   :  { %336 = vst.msk [vmem:[%s3019_s12 + $0x10] sm:$0xff] %vm185_vm0, %v306_v22  ;;  %2357 = vmatprep.mubr.msk.f32.mxu1 %vm185_vm0, %v306_v22  ;;  %2377 = vmatprep.mubr.msk.f32.mxu0 %vm185_vm0, %v306_v22  ;;  %v325_v25 = vpop.f32.mrf.mxu1 }
  0xdb   :  { %2358 = vmatmul.mubr.msk.f32.gmra.mxu1 %vm185_vm0, %v311_v17  ;;  %2378 = vmatmul.mubr.msk.f32.gmra.mxu0 %vm185_vm0, %v311_v17  ;;  %341 = vst.msk [vmem:[%s3019_s12 + $0x38] sm:$0xff] %vm185_vm0, %v331_v24  ;;  %v326_v26 = vadd.f32 %v2167_v8, %v325_v25 }
  0xdc   :  { %2360 = vmatprep.mubr.msk.f32.mxu1 %vm185_vm0, %v316_v21  ;;  %2380 = vmatprep.mubr.msk.f32.mxu0 %vm185_vm0, %v316_v21 }
  0xdd   :  { %340 = vst.msk [vmem:[%s3019_s12 + $0x30] sm:$0xff] %vm185_vm0, %v326_v26  ;;  %2389 = vmatpush3.msra.mxu1 %v600_v19 }
  0xde   :  { %2390 = vmatprep.subr.mxu1 %v599_v27 }
  0xdf   :  { %2361 = vmatmul.mubr.msk.f32.gmra.mxu1 %vm185_vm0, %v321_v16  ;;  %2381 = vmatmul.mubr.msk.f32.gmra.mxu0 %vm185_vm0, %v321_v16 }
  0xe0   :  { %2363 = vmatprep.mubr.msk.f32.mxu1 %vm185_vm0, %v326_v26  ;;  %2383 = vmatprep.mubr.msk.f32.mxu0 %vm185_vm0, %v326_v26 }
  0xe1   :  { %2391 = vmatpush3.msra.mxu1 %v599_v27 }
  0xe2   :  { %2392 = vmatprep.subr.mxu1 %v598_v28 }
  0xe3   :  { %2364 = vmatmul.mubr.msk.f32.gmra.mxu1 %vm185_vm0, %v331_v24  ;;  %2384 = vmatmul.mubr.msk.f32.gmra.mxu0 %vm185_vm0, %v331_v24 }
  0xe4   :  { %2394 = vmatprep.mubr.msk.f32.mxu1 %vm185_vm0, %v296_v13  ;;  %2393 = vmatpush3.msra.mxu1 %v598_v28 }
  0xe5   :  { %2411 = vmatprep.subr.mxu1 %v2556_v29  ;;  %2408 = vmatprep.mubr.msk.f32.mxu0 %vm2557_vm1, %v2556_v29 }
  0xe7   :  { %2395 = vmatmul.mubr.msk.f32.vlgmr.msra.gmra.mxu1 %vm185_vm0, %v301_v11 }
  0xe8   :  { %2397 = vmatprep.mubr.msk.f32.mxu1 %vm185_vm0, %v306_v22 }
  0xeb   :  { %2398 = vmatmul.mubr.msk.f32.gmra.mxu1 %vm185_vm0, %v311_v17 }
  0xec   :  { %2400 = vmatprep.mubr.msk.f32.mxu1 %vm185_vm0, %v316_v21 }
  0xef   :  { %2401 = vmatmul.mubr.msk.f32.gmra.mxu1 %vm185_vm0, %v321_v16 }
  0xf0   :  { %2403 = vmatprep.mubr.msk.f32.mxu1 %vm185_vm0, %v326_v26 }
  0xf3   :  { %2404 = vmatmul.mubr.msk.f32.gmra.mxu1 %vm185_vm0, %v331_v24 }
  0xf4   :  { %2413 = vmatprep.mubr.msk.f32.mxu1 %vm2557_vm1, %v2556_v29 }
 0x197   :  { %v2356_v31 = vpop.f32.mrf.mxu1  ;;  %v2376_v32 = vpop.f32.mrf.mxu0 }
 0x198   :  { %v565_v34 = vadd.f32 %v2376_v32, %v2185_v30  ;;  %v449_v38 = vadd.f32 %v2356_v31, %v2176_v33 }
 0x199   :  { %v443_v35 = vpop.f32.mrf.mxu1  ;;  %v559_v36 = vpop.f32.mrf.mxu0 }
 0x19a   :  { %v560_v37 = vadd.f32 %v2185_v30, %v559_v36  ;;  %2412 = vmatpush3.xpose.msk.msra.mxu1 %vm714_vm2, %v565_v34  ;;  %v444_v42 = vadd.f32 %v2176_v33, %v443_v35 }
 0x19b   :  { %v2359_v39 = vpop.f32.mrf.mxu1  ;;  %v2379_v40 = vpop.f32.mrf.mxu0  ;;  %2421 = vmatprep.subr.mxu1 %v2556_v29 }
 0x19c   :  { %v575_v41 = vadd.f32 %v2379_v40, %v2185_v30  ;;  %2407 = vmatpush3.xpose.msk.msra.mxu0 %vm714_vm2, %v560_v37  ;;  %v459_v46 = vadd.f32 %v2359_v39, %v2176_v33 }
 0x19d   :  { %v453_v43 = vpop.f32.mrf.mxu1  ;;  %v569_v44 = vpop.f32.mrf.mxu0  ;;  %2414 = vmatmul.mubr.msk.f32.vlgmr.msra.gmra.mxu1 %vm714_vm2, %v449_v38  ;;  %2416 = vmatprep.subr.mxu0 %v2556_v29 }
 0x19e   :  { %v570_v45 = vadd.f32 %v2185_v30, %v569_v44  ;;  %2422 = vmatpush3.xpose.msk.msra.mxu1 %vm714_vm2, %v575_v41  ;;  %2423 = vmatprep.mubr.msk.f32.mxu1 %vm2557_vm1, %v2556_v29  ;;  %v454_v50 = vadd.f32 %v2176_v33, %v453_v43 }
 0x19f   :  { %v2362_v47 = vpop.f32.mrf.mxu1  ;;  %v2382_v48 = vpop.f32.mrf.mxu0  ;;  %2409 = vmatmul.mubr.msk.f32.vlgmr.msra.gmra.mxu0 %vm714_vm2, %v444_v42  ;;  %2431 = vmatprep.subr.mxu1 %v2556_v29 }
 0x1a0   :  { %v585_v49 = vadd.f32 %v2382_v48, %v2185_v30  ;;  %2417 = vmatpush3.xpose.msk.msra.mxu0 %vm714_vm2, %v570_v45  ;;  %2418 = vmatprep.mubr.msk.f32.mxu0 %vm2557_vm1, %v2556_v29  ;;  %v469_v54 = vadd.f32 %v2362_v47, %v2176_v33 }
 0x1a1   :  { %v463_v51 = vpop.f32.mrf.mxu1  ;;  %v579_v52 = vpop.f32.mrf.mxu0  ;;  %2424 = vmatmul.mubr.msk.f32.vlgmr.msra.gmra.mxu1 %vm714_vm2, %v459_v46  ;;  %2426 = vmatprep.subr.mxu0 %v2556_v29 }
 0x1a2   :  { %v580_v53 = vadd.f32 %v2185_v30, %v579_v52  ;;  %2432 = vmatpush3.xpose.msk.msra.mxu1 %vm714_vm2, %v585_v49  ;;  %2433 = vmatprep.mubr.msk.f32.mxu1 %vm2557_vm1, %v2556_v29  ;;  %v464_v58 = vadd.f32 %v2176_v33, %v463_v51 }
 0x1a3   :  { %v2365_v55 = vpop.f32.mrf.mxu1  ;;  %v2385_v56 = vpop.f32.mrf.mxu0  ;;  %2419 = vmatmul.mubr.msk.f32.vlgmr.msra.gmra.mxu0 %vm714_vm2, %v454_v50  ;;  %2441 = vmatprep.subr.mxu1 %v2556_v29 }
 0x1a4   :  { %v595_v57 = vadd.f32 %v2385_v56, %v2185_v30  ;;  %2427 = vmatpush3.xpose.msk.msra.mxu0 %vm714_vm2, %v580_v53  ;;  %2428 = vmatprep.mubr.msk.f32.mxu0 %vm2557_vm1, %v2556_v29  ;;  %v479_v63 = vadd.f32 %v2365_v55, %v2176_v33 }
 0x1a5   :  { %v473_v59 = vpop.f32.mrf.mxu1  ;;  %v589_v60 = vpop.f32.mrf.mxu0  ;;  %2434 = vmatmul.mubr.msk.f32.vlgmr.msra.gmra.mxu1 %vm714_vm2, %v469_v54  ;;  %2436 = vmatprep.subr.mxu0 %v2556_v29 }
 0x1a6   :  { %v590_v62 = vadd.f32 %v2185_v30, %v589_v60  ;;  %2442 = vmatpush3.xpose.msk.msra.mxu1 %vm714_vm2, %v595_v57  ;;  %2443 = vmatprep.mubr.msk.f32.mxu1 %vm2557_vm1, %v2556_v29  ;;  %v474_v3 = vadd.f32 %v2176_v33, %v473_v59 }
 0x1a7   :  { %v2396_v1 = vpop.f32.mrf.mxu1  ;;  %2429 = vmatmul.mubr.msk.f32.vlgmr.msra.gmra.mxu0 %vm714_vm2, %v464_v58  ;;  %2451 = vmatprep.subr.mxu1 %v2556_v29 }
 0x1a8   :  { %v681_v2 = vadd.f32 %v2396_v1, %v2855_v61  ;;  %2437 = vmatpush3.xpose.msk.msra.mxu0 %vm714_vm2, %v590_v62  ;;  %2438 = vmatprep.mubr.msk.f32.mxu0 %vm2557_vm1, %v2556_v29 }
 0x1a9   :  { %v675_v4 = vpop.f32.mrf.mxu1  ;;  %2444 = vmatmul.mubr.msk.f32.vlgmr.msra.gmra.mxu1 %vm714_vm2, %v479_v63  ;;  %2446 = vmatprep.subr.mxu0 %v2556_v29 }
 0x1aa   :  { %v676_v5 = vadd.f32 %v2855_v61, %v675_v4  ;;  %2452 = vmatpush3.msra.mxu1 %v681_v2  ;;  %2453 = vmatprep.mubr.msk.f32.mxu1 %vm2557_vm1, %v2556_v29 }
 0x1ab   :  { %v2399_v6 = vpop.f32.mrf.mxu1  ;;  %2439 = vmatmul.mubr.msk.f32.vlgmr.msra.gmra.mxu0 %vm714_vm2, %v474_v3  ;;  %2461 = vmatprep.subr.mxu1 %v2556_v29 }
 0x1ac   :  { %v2875_v7 = vadd.f32 %v2399_v6, %v2855_v61  ;;  %2447 = vmatpush3.msra.mxu0 %v676_v5  ;;  %2448 = vmatprep.mubr.msk.f32.mxu0 %vm2557_vm1, %v2556_v29 }
 0x1ad   :  { %v685_v8 = vpop.f32.mrf.mxu1  ;;  %2456 = vmatprep.subr.mxu0 %v2556_v29 }
 0x1ae   :  { %v2881_v9 = vadd.f32 %v2855_v61, %v685_v8 }
 0x1af   :  { %v2402_v11 = vpop.f32.mrf.mxu1 }
 0x1b0   :  { %v2884_v12 = vadd.f32 %v2402_v11, %v2855_v61 }
 0x1b1   :  { %v695_v13 = vpop.f32.mrf.mxu1 }
 0x1b2   :  { %v2887_v14 = vadd.f32 %v2855_v61, %v695_v13 }
 0x1b3   :  { %v2405_v15 = vpop.f32.mrf.mxu1 }
 0x1b4   :  { %v2890_v16 = vadd.f32 %v2405_v15, %v2855_v61 }
 0x1b5   :  { %v2892_v17 = vpop.f32.mrf.mxu1 }
 0x25d   :  { %v863_v19 = vpop.f32.mrf.mxu1 }
 0x25e   :  { %v1329_v27 = vsel %vm2896_vm3, %v863_v19, -1e+30 }
 0x25f   :  { %v787_v21 = vpop.f32.mrf.mxu0  ;;  %v2415_v22 = vpop.f32.mrf.mxu1  ;;  %v1340_v31 = vsel %vm1336_vm4, %v1329_v27, -inf }
 0x260   :  { %v1328_v23 = vsel %vm2896_vm3, %v787_v21, -1e+30 }
 0x261   :  { %v2410_v24 = vpop.f32.mrf.mxu0  ;;  %v1337_v25 = vsel %vm1336_vm4, %v1328_v23, -inf  ;;  %v1015_v26 = vpop.f32.mrf.mxu1 }
 0x262   :  { %1338 = vmax.xlane.f32.xlu0 %v1337_v25  ;;  %v1331_v34 = vsel %vm2896_vm3, %v1015_v26, -1e+30 }
 0x263   :  { %v939_v0 = vpop.f32.mrf.mxu0  ;;  %v2425_v28 = vpop.f32.mrf.mxu1  ;;  %v1346_v39 = vsel %vm1336_vm4, %v1331_v34, -inf }
 0x264   :  { %v1330_v10 = vsel %vm2896_vm3, %v939_v0, -1e+30 }
 0x265   :  { %v2420_v30 = vpop.f32.mrf.mxu0  ;;  %v1343_v32 = vsel %vm1336_vm4, %v1330_v10, -inf  ;;  %v1167_v33 = vpop.f32.mrf.mxu1 }
 0x266   :  { %1341 = vmax.xlane.f32.xlu0 %v1340_v31  ;;  %1344 = vmax.xlane.f32.xlu1 %v1343_v32  ;;  %v1333_v42 = vsel %vm2896_vm3, %v1167_v33, -1e+30 }
 0x267   :  { %v1091_v35 = vpop.f32.mrf.mxu0  ;;  %v2435_v36 = vpop.f32.mrf.mxu1  ;;  %v1352_v46 = vsel %vm1336_vm4, %v1333_v42, -inf }
 0x268   :  { %v1332_v37 = vsel %vm2896_vm3, %v1091_v35, -1e+30 }
 0x269   :  { %v2430_v38 = vpop.f32.mrf.mxu0  ;;  %v1349_v40 = vsel %vm1336_vm4, %v1332_v37, -inf  ;;  %v1319_v41 = vpop.f32.mrf.mxu1 }
 0x26a   :  { %1347 = vmax.xlane.f32.xlu1 %v1346_v39  ;;  %1350 = vmax.xlane.f32.xlu0 %v1349_v40  ;;  %v1335_v49 = vsel %vm2896_vm3, %v1319_v41, -1e+30 }
 0x26b   :  { %v1243_v43 = vpop.f32.mrf.mxu0  ;;  %v2445_v44 = vpop.f32.mrf.mxu1  ;;  %v1358_v50 = vsel %vm1336_vm4, %v1335_v49, -inf }
 0x26c   :  { %v1334_v45 = vsel %vm2896_vm3, %v1243_v43, -1e+30 }
 0x26d   :  { %v1355_v47 = vsel %vm1336_vm4, %v1334_v45, -inf  ;;  %v2440_v48 = vpop.f32.mrf.mxu0 }
 0x26e   :  { %1353 = vmax.xlane.f32.xlu1 %v1352_v46  ;;  %1356 = vmax.xlane.f32.xlu0 %v1355_v47 }
 0x272   :  { %1359 = vmax.xlane.f32.xlu1 %v1358_v50 }
 0x2eb   :  { %v1339_v51 = vpop.xlane.xlu0 %1338 }
 0x2ec   :  { %v1361_v52 = vsub.f32 %v1328_v23, %v1339_v51 }
 0x2ee   :  { %v1369_v53 = vmul.f32 1.442695, %v1361_v52  ;;  %v706_v52 = vadd.f32 %v2855_v61, %v2892_v17 }
 0x2ef   :  { %v1342_v54 = vpop.xlane.xlu0 %1341  ;;  %v1345_v55 = vpop.xlane.xlu1 %1344 }
 0x2f0   :  { %2522 = vpow2.f32 %v1369_v53  ;;  %v1362_v56 = vsub.f32 %v1329_v27, %v1342_v54  ;;  %v1363_v57 = vsub.f32 %v1330_v10, %v1345_v55  ;;  %v2010_v54 = vld [vmem:[%s3023_s9 + $0x8] sm:$0xff]  ;;  %v2009_v55 = vld [vmem:[%s3023_s9] sm:$0xff] }
 0x2f2   :  { %v1371_v58 = vmul.f32 1.442695, %v1362_v56  ;;  %v1373_v59 = vmul.f32 1.442695, %v1363_v57 }
 0x2f3   :  { %v1348_v60 = vpop.xlane.xlu1 %1347  ;;  %v1351_v62 = vpop.xlane.xlu0 %1350 }
 0x2f4   :  { %2524 = vpow2.f32 %v1371_v58  ;;  %v1364_v63 = vsub.f32 %v1331_v34, %v1348_v60  ;;  %v1365_v1 = vsub.f32 %v1332_v37, %v1351_v62 }
 0x2f5   :  { %2526 = vpow2.f32 %v1373_v59 }
 0x2f6   :  { %v1375_v2 = vmul.f32 1.442695, %v1364_v63  ;;  %v1377_v3 = vmul.f32 1.442695, %v1365_v1 }
 0x2f7   :  { %v1354_v4 = vpop.xlane.xlu1 %1353  ;;  %v1357_v5 = vpop.xlane.xlu0 %1356 }
 0x2f8   :  { %2528 = vpow2.f32 %v1375_v2  ;;  %v1366_v6 = vsub.f32 %v1333_v42, %v1354_v4  ;;  %v1367_v8 = vsub.f32 %v1334_v45, %v1357_v5 }
 0x2f9   :  { %2530 = vpow2.f32 %v1377_v3 }
 0x2fa   :  { %v1379_v11 = vmul.f32 1.442695, %v1366_v6  ;;  %v1381_v13 = vmul.f32 1.442695, %v1367_v8 }
 0x2fb   :  { %v1360_v15 = vpop.xlane.xlu1 %1359 }
 0x2fc   :  { %2532 = vpow2.f32 %v1379_v11  ;;  %v1368_v18 = vsub.f32 %v1335_v49, %v1360_v15  ;;  %v2227_v11 = vld [vmem:[%s3024_s10] ss:$0 sm:$0xff] }
 0x2fd   :  { %v2523_v19 = vpop.eup %2522  ;;  %2534 = vpow2.f32 %v1381_v13 }
 0x2fe   :  { %v1383_v20 = vmul.f32 1.442695, %v1368_v18  ;;  %v1385_v21 = vsel %vm1336_vm4, %v2523_v19, 0.0 }
 0x2ff   :  { %1386 = vadd.xlane.f32.xlu0 %v1385_v21 }
 0x300   :  { %2536 = vpow2.f32 %v1383_v20 }
 0x301   :  { %v2525_v22 = vpop.eup %2524 }
 0x302   :  { %v2527_v23 = vpop.eup %2526  ;;  %v1388_v24 = vsel %vm1336_vm4, %v2525_v22, 0.0 }
 0x303   :  { %1389 = vadd.xlane.f32.xlu1 %v1388_v24  ;;  %v1391_v25 = vsel %vm1336_vm4, %v2527_v23, 0.0 }
 0x304   :  { %1392 = vadd.xlane.f32.xlu0 %v1391_v25 }
 0x305   :  { %v2529_v26 = vpop.eup %2528 }
 0x306   :  { %v2531_v27 = vpop.eup %2530  ;;  %v1394_v0 = vsel %vm1336_vm4, %v2529_v26, 0.0 }
 0x307   :  { %1395 = vadd.xlane.f32.xlu1 %v1394_v0  ;;  %v1397_v28 = vsel %vm1336_vm4, %v2531_v27, 0.0 }
 0x308   :  { %1398 = vadd.xlane.f32.xlu0 %v1397_v28 }
 0x309   :  { %v2533_v10 = vpop.eup %2532 }
 0x30a   :  { %v2535_v30 = vpop.eup %2534  ;;  %v1400_v31 = vsel %vm1336_vm4, %v2533_v10, 0.0 }
 0x30b   :  { %1401 = vadd.xlane.f32.xlu1 %v1400_v31  ;;  %v1403_v32 = vsel %vm1336_vm4, %v2535_v30, 0.0 }
 0x30c   :  { %1404 = vadd.xlane.f32.xlu0 %v1403_v32 }
 0x30d   :  { %v2537_v33 = vpop.eup %2536 }
 0x30e   :  { %v1406_v34 = vsel %vm1336_vm4, %v2537_v33, 0.0 }
 0x30f   :  { %1407 = vadd.xlane.f32.xlu1 %v1406_v34 }
 0x388   :  { %v1387_v35 = vpop.xlane.xlu0 %1386 }
 0x389   :  { %2538 = vrcp.f32 %v1387_v35 }
 0x38c   :  { %v1390_v36 = vpop.xlane.xlu1 %1389 }
 0x38d   :  { %2540 = vrcp.f32 %v1390_v36  ;;  %v1393_v37 = vpop.xlane.xlu0 %1392 }
 0x38e   :  { %2542 = vrcp.f32 %v1393_v37 }
 0x390   :  { %v1396_v38 = vpop.xlane.xlu1 %1395 }
 0x391   :  { %2544 = vrcp.f32 %v1396_v38  ;;  %v1399_v39 = vpop.xlane.xlu0 %1398 }
 0x392   :  { %2546 = vrcp.f32 %v1399_v39 }
 0x394   :  { %v1402_v40 = vpop.xlane.xlu1 %1401 }
 0x395   :  { %2548 = vrcp.f32 %v1402_v40  ;;  %v1405_v41 = vpop.xlane.xlu0 %1404 }
 0x396   :  { %v2539_v42 = vpop.eup %2538  ;;  %2550 = vrcp.f32 %v1405_v41 }
 0x397   :  { %v1417_v43 = vmul.f32 %v2539_v42, %v2523_v19 }
 0x398   :  { %v1408_v44 = vpop.xlane.xlu1 %1407 }
 0x399   :  { %2552 = vrcp.f32 %v1408_v44  ;;  %2449 = vmatmul.mubr.msk.f32.vlgmr.msra.gmra.mxu0 %vm1336_vm4, %v1417_v43 }
 0x39a   :  { %v2541_v45 = vpop.eup %2540  ;;  %2457 = vmatpush3.msra.mxu0 %v2881_v9  ;;  %2458 = vmatprep.mubr.msk.f32.mxu0 %vm2557_vm1, %v2556_v29 }
 0x39b   :  { %v2543_v46 = vpop.eup %2542  ;;  %2466 = vmatprep.subr.mxu0 %v2556_v29  ;;  %v1418_v47 = vmul.f32 %v2541_v45, %v2525_v22 }
 0x39c   :  { %v1419_v48 = vmul.f32 %v2543_v46, %v2527_v23 }
 0x39d   :  { %2454 = vmatmul.mubr.msk.f32.vlgmr.msra.gmra.mxu1 %vm1336_vm4, %v1418_v47 }
 0x39e   :  { %v2545_v49 = vpop.eup %2544  ;;  %2459 = vmatmul.mubr.msk.f32.vlgmr.msra.gmra.mxu0 %vm1336_vm4, %v1419_v48  ;;  %2462 = vmatpush3.msra.mxu1 %v2875_v7 }
 0x39f   :  { %v2547_v50 = vpop.eup %2546  ;;  %2467 = vmatpush3.msra.mxu0 %v2887_v14  ;;  %2463 = vmatprep.mubr.msk.f32.mxu1 %vm2557_vm1, %v2556_v29  ;;  %v1420_v9 = vmul.f32 %v2545_v49, %v2529_v26 }
 0x3a0   :  { %2468 = vmatprep.mubr.msk.f32.mxu0 %vm2557_vm1, %v2556_v29  ;;  %2471 = vmatprep.subr.mxu1 %v2556_v29  ;;  %v1421_v51 = vmul.f32 %v2547_v50, %v2531_v27 }
 0x3a1   :  { %2476 = vmatprep.subr.mxu0 %v2556_v29  ;;  %2464 = vmatmul.mubr.msk.f32.vlgmr.msra.gmra.mxu1 %vm1336_vm4, %v1420_v9 }
 0x3a2   :  { %v2549_v7 = vpop.eup %2548  ;;  %2469 = vmatmul.mubr.msk.f32.vlgmr.msra.gmra.mxu0 %vm1336_vm4, %v1421_v51  ;;  %2472 = vmatpush3.msra.mxu1 %v2884_v12 }
 0x3a3   :  { %v2551_v14 = vpop.eup %2550  ;;  %2477 = vmatpush3.msra.mxu0 %v706_v52  ;;  %2473 = vmatprep.mubr.msk.f32.mxu1 %vm2557_vm1, %v2556_v29  ;;  %v1422_v53 = vmul.f32 %v2549_v7, %v2533_v10 }
 0x3a4   :  { %2478 = vmatprep.mubr.msk.f32.mxu0 %vm2557_vm1, %v2556_v29  ;;  %2481 = vmatprep.subr.mxu1 %v2556_v29  ;;  %v1423_v61 = vmul.f32 %v2551_v14, %v2535_v30 }
 0x3a5   :  { %2474 = vmatmul.mubr.msk.f32.vlgmr.msra.gmra.mxu1 %vm1336_vm4, %v1422_v53  ;;  %2486 = vmatprep.subr.mxu0 %v2010_v54 }
 0x3a6   :  { %v2553_v17 = vpop.eup %2552  ;;  %2479 = vmatmul.mubr.msk.f32.vlgmr.msra.gmra.mxu0 %vm1336_vm4, %v1423_v61  ;;  %2482 = vmatpush3.msra.mxu1 %v2890_v16 }
 0x3a7   :  { %2483 = vmatprep.mubr.msk.f32.mxu1 %vm2557_vm1, %v2556_v29  ;;  %v1424_v12 = vmul.f32 %v2553_v17, %v2537_v33  ;;  %2487 = vmatpush3.msra.mxu0 %v2010_v54 }
 0x3a8   :  { %2488 = vmatprep.subr.mxu0 %v2009_v55 }
 0x3a9   :  { %2484 = vmatmul.mubr.msk.f32.vlgmr.msra.gmra.mxu1 %vm1336_vm4, %v1424_v12  ;;  %2489 = vmatpush3.msra.mxu0 %v2009_v55 }
 0x459   :  { %v1494_v56 = vpop.f32.mrf.mxu0 }
 0x45a   :  { %2490 = vmatprep.mubr.msk.f32.mxu0 %vm714_vm2, %v1494_v56 }
 0x45b   :  { %v2450_v16 = vpop.f32.mrf.mxu0 }
 0x45d   :  { %v1567_v29 = vpop.f32.mrf.mxu1 }
 0x45e   :  { %v1640_v57 = vpop.f32.mrf.mxu0  ;;  %2491 = vmatmul.mubr.msk.f32.vlgmr.msra.gmra.mxu0 %vm714_vm2, %v1567_v29 }
 0x45f   :  { %v2455_v58 = vpop.f32.mrf.mxu1  ;;  %2493 = vmatprep.mubr.msk.f32.mxu0 %vm714_vm2, %v1640_v57 }
 0x460   :  { %v2460_v59 = vpop.f32.mrf.mxu0 }
 0x461   :  { %v1713_v60 = vpop.f32.mrf.mxu1 }
 0x462   :  { %v1786_v62 = vpop.f32.mrf.mxu0  ;;  %2494 = vmatmul.mubr.msk.f32.gmra.mxu0 %vm714_vm2, %v1713_v60 }
 0x463   :  { %v2465_v63 = vpop.f32.mrf.mxu1  ;;  %2496 = vmatprep.mubr.msk.f32.mxu0 %vm714_vm2, %v1786_v62 }
 0x464   :  { %v2470_v1 = vpop.f32.mrf.mxu0 }
 0x465   :  { %v1859_v2 = vpop.f32.mrf.mxu1 }
 0x466   :  { %v1932_v3 = vpop.f32.mrf.mxu0  ;;  %2497 = vmatmul.mubr.msk.f32.gmra.mxu0 %vm714_vm2, %v1859_v2 }
 0x467   :  { %v2475_v4 = vpop.f32.mrf.mxu1  ;;  %2499 = vmatprep.mubr.msk.f32.mxu0 %vm714_vm2, %v1932_v3 }
 0x468   :  { %v2480_v5 = vpop.f32.mrf.mxu0 }
 0x469   :  { %v2005_v6 = vpop.f32.mrf.mxu1 }
 0x46a   :  { %2500 = vmatmul.mubr.msk.f32.gmra.mxu0 %vm714_vm2, %v2005_v6 }
 0x46b   :  { %v2485_v8 = vpop.f32.mrf.mxu1 }
 0x51e   :  { %v2492_v13 = vpop.f32.mrf.mxu0 }
 0x51f   :  { %v2114_v15 = vadd.f32 %v2492_v13, %v2227_v11 }
 0x520   :  { %v2108_v18 = vpop.f32.mrf.mxu0 }
 0x521   :  { %2148 = vst.msk [vmem:[%s3025_s13 + $0x8] sm:$0xff] %vm185_vm0, %v2114_v15  ;;  %v2109_v19 = vadd.f32 %v2227_v11, %v2108_v18 }
 0x522   :  { %v2495_v20 = vpop.f32.mrf.mxu0 }
 0x523   :  { %2147 = vst.msk [vmem:[%s3025_s13] sm:$0xff] %vm185_vm0, %v2109_v19  ;;  %v2124_v21 = vadd.f32 %v2495_v20, %v2227_v11 }
 0x524   :  { %v2118_v22 = vpop.f32.mrf.mxu0 }
 0x525   :  { %2150 = vst.msk [vmem:[%s3025_s13 + $0x18] sm:$0xff] %vm185_vm0, %v2124_v21  ;;  %v2119_v23 = vadd.f32 %v2227_v11, %v2118_v22 }
 0x526   :  { %v2498_v24 = vpop.f32.mrf.mxu0 }
 0x527   :  { %2149 = vst.msk [vmem:[%s3025_s13 + $0x10] sm:$0xff] %vm185_vm0, %v2119_v23  ;;  %v2134_v25 = vadd.f32 %v2498_v24, %v2227_v11 }
 0x528   :  { %v2128_v26 = vpop.f32.mrf.mxu0 }
 0x529   :  { %2152 = vst.msk [vmem:[%s3025_s13 + $0x28] sm:$0xff] %vm185_vm0, %v2134_v25  ;;  %v2129_v27 = vadd.f32 %v2227_v11, %v2128_v26 }
 0x52a   :  { %v2501_v0 = vpop.f32.mrf.mxu0 }
 0x52b   :  { %2151 = vst.msk [vmem:[%s3025_s13 + $0x20] sm:$0xff] %vm185_vm0, %v2129_v27  ;;  %v2144_v28 = vadd.f32 %v2501_v0, %v2227_v11 }
 0x52c   :  { %v2138_v10 = vpop.f32.mrf.mxu0 }
 0x52d   :  { %2154 = vst.msk [vmem:[%s3025_s13 + $0x38] sm:$0xff] %vm185_vm0, %v2144_v28  ;;  %v2139_v30 = vadd.f32 %v2227_v11, %v2138_v10 }
 0x52f   :  { %2153 = vst.msk [vmem:[%s3025_s13 + $0x30] sm:$0xff] %vm185_vm0, %v2139_v30 }

</bundles_post_ra>
